<compile_context>
chip_gen: v5e
topology: v5e:2x2
jax: 0.10.0
libtpu: 0.0.40
codegen_flags: <defaults>
</compile_context>

<pallas_src>
import jax
import jax.numpy as jnp
from jax import lax
from jax.experimental import pallas as pl
from jax.experimental.pallas import tpu as pltpu


def prepare_spatial_params(params, H, W):
    """Parameter-only preprocessing.  Run ONCE at parameter init (hoisted out
    of the per-forward path)."""
    F = params["w_se"].shape[0]
    C = F
    # Dense fused-linear weight: z = [SE | S_prev] @ wcat  (nn.Linear uses x @ W^T)
    wcat = jnp.concatenate([params["w_se"].T, params["w_sp"].T], axis=0)      # (2F, F)
    # Linear bias, tiled to the lane-dense (1, H*F) layout (full-width vreg add).
    blin = jnp.tile(params["b_se"] + params["b_sp"], H).reshape(1, H * F)     # (1, H*F)
    # Conv weight re-ordered as 9 taps of shape (Cout, Cin), k = ky*3 + kx.
    wtaps = jnp.transpose(params["w_conv"], (2, 3, 0, 1)).reshape(9, C, C)    # (9, C, C)
    # Conv bias pre-broadcast so the kernel starts its accumulator with it.
    bconv = jnp.broadcast_to(params["b_conv"][:, None], (C, H * W)).astype(jnp.float32)
    # 0/1 validity masks for the 9 taps of a 3x3 SAME conv (zero-padding),
    # flattened (h, w) -> lane.  Shape (9, H*W).
    hh = jnp.arange(H)
    ww = jnp.arange(W)
    ms = []
    for ky in range(3):
        mh = (hh + ky - 1 >= 0) & (hh + ky - 1 < H)
        for kx in range(3):
            mw = (ww + kx - 1 >= 0) & (ww + kx - 1 < W)
            ms.append((mh[:, None] & mw[None, :]).reshape(H * W))
    masks = jnp.stack(ms, axis=0).astype(jnp.float32)                         # (9, H*W)
    return dict(wcat=wcat, blin=blin, wtaps=wtaps, bconv=bconv, masks=masks)


def spatial_module_pallas(SE, S_prev, SR_pre, prep):
    """SE, S_prev, SR_pre: NCHW float32 with C == W == feature_size."""
    B, C, H, W = SE.shape
    F = W
    assert C == F, "feature_size must equal both channel count and last dim"
    F2 = 2 * F
    HW = H * W

    # ---- per-forward activation layout plumbing only (params prepared once) ----
    xcat = jnp.concatenate([SE, S_prev], axis=-1)                    # (B, C, H, 2F)
    xcat = jnp.transpose(xcat, (0, 2, 1, 3)).reshape(B, H * C, F2)   # rows = h*C + c
    srp = SR_pre.reshape(B, C, HW)                                   # lane-dense per batch

    def kernel(x_ref, sr_ref, wcat_ref, blin_ref, wtaps_ref, bconv_ref,
               mask_ref, out_ref, zbuf_ref):
        # ---- fused linear, M-major: (H*C, 2F) @ (2F, F) on the MXU ----------
        zflat = jnp.dot(x_ref[0], wcat_ref[...],
                        preferred_element_type=jnp.float32)           # (H*C, F)
        # Relayout (H*C, F) -> lane-dense (C, H*F): aligned row-slices into
        # lane-slice stores of a VMEM scratch (store slots have slack here).
        for h in range(H):
            zbuf_ref[:, h * F:(h + 1) * F] = zflat[h * C:(h + 1) * C, :]
        z = zbuf_ref[...] + blin_ref[...]                              # (C, H*F)
        AS = jax.nn.sigmoid(z)
        S = jnp.tanh(z)

        # ---- 3x3 SAME conv: 9 roll/mask taps accumulated on the MXU ---------
        xs = sr_ref[0]                                                 # (C, H*W)
        acc = bconv_ref[...]                                           # bias-initialized
        for k in range(9):
            ky, kx = divmod(k, 3)
            off = (ky - 1) * W + (kx - 1)
            t = xs if off == 0 else pltpu.roll(xs, shift=(-off) % HW, axis=1)
            t = t * mask_ref[k:k + 1, :]                               # zero out-of-image lanes
            acc = acc + jnp.dot(wtaps_ref[k], t,
                                preferred_element_type=jnp.float32)
        ATT = jnp.tanh(acc)

        out_ref[0] = (S + ATT) * AS                                    # unmasked 256-lane store

    out = pl.pallas_call(
        kernel,
        out_shape=jax.ShapeDtypeStruct((B, C, HW), jnp.float32),
        grid=(B,),
        in_specs=[
            pl.BlockSpec((1, H * C, F2), lambda b: (b, 0, 0)),   # xcat (per batch)
            pl.BlockSpec((1, C, HW), lambda b: (b, 0, 0)),       # SR_pre (per batch)
            pl.BlockSpec((F2, F), lambda b: (0, 0)),             # wcat (fetched once)
            pl.BlockSpec((1, H * F), lambda b: (0, 0)),          # blin
            pl.BlockSpec((9, C, C), lambda b: (0, 0, 0)),        # conv taps
            pl.BlockSpec((C, HW), lambda b: (0, 0)),             # conv bias (pre-broadcast)
            pl.BlockSpec((9, HW), lambda b: (0, 0)),             # edge masks
        ],
        out_specs=pl.BlockSpec((1, C, HW), lambda b: (b, 0, 0)),
        scratch_shapes=[pltpu.VMEM((C, H * F), jnp.float32)],
        compiler_params=pltpu.CompilerParams(
            dimension_semantics=("parallel",)),
    )(xcat, srp, prep["wcat"], prep["blin"], prep["wtaps"],
      prep["bconv"], prep["masks"])

    # (B, C, H*W) -> NCHW is a free reshape.
    return out.reshape(B, C, H, W)


def spatial_module_ref(SE, S_prev, SR_pre, params):
    """Pure-JAX reference matching the PyTorch forward."""
    z = (jnp.einsum("bchw,fw->bchf", SE, params["w_se"]) + params["b_se"]
         + jnp.einsum("bchw,fw->bchf", S_prev, params["w_sp"]) + params["b_sp"])
    AS = jax.nn.sigmoid(z)
    S = jnp.tanh(z)
    conv = lax.conv_general_dilated(
        SR_pre, params["w_conv"], window_strides=(1, 1), padding="SAME",
        dimension_numbers=("NCHW", "OIHW", "NCHW"),
        precision=lax.Precision.HIGHEST)
    ATT_S = jnp.tanh(conv + params["b_conv"][None, :, None, None])
    return (S + ATT_S) * AS


if __name__ == "__main__":
    feature_size = 16   # = channels = last spatial dim (W)
    B, C, H, W = 2, feature_size, 16, feature_size

    key = jax.random.PRNGKey(0)
    keys = jax.random.split(key, 9)
    params = {
        "w_se": 0.1 * jax.random.normal(keys[0], (feature_size, feature_size), jnp.float32),
        "b_se": 0.1 * jax.random.normal(keys[1], (feature_size,), jnp.float32),
        "w_sp": 0.1 * jax.random.normal(keys[2], (feature_size, feature_size), jnp.float32),
        "b_sp": 0.1 * jax.random.normal(keys[3], (feature_size,), jnp.float32),
        "w_conv": 0.1 * jax.random.normal(keys[4], (feature_size, feature_size, 3, 3), jnp.float32),
        "b_conv": 0.1 * jax.random.normal(keys[5], (feature_size,), jnp.float32),
    }

    SE = jax.random.normal(keys[6], (B, C, H, W), jnp.float32)
    S_prev = jax.random.normal(keys[7], (B, C, H, W), jnp.float32)
    SR_pre = jax.random.normal(keys[8], (B, C, H, W), jnp.float32)

    # Parameter-only prep, done once at init (hoisted out of the forward path).
    prep = jax.tree_util.tree_map(jax.block_until_ready,
                                  prepare_spatial_params(params, H, W))

    forward = jax.jit(spatial_module_pallas)
    out = forward(SE, S_prev, SR_pre, prep)
    out = jax.block_until_ready(out)

    ref = spatial_module_ref(SE, S_prev, SR_pre, params)
    assert out.shape == (B, C, H, W)
    max_err = float(jnp.max(jnp.abs(out - ref)))
    assert jnp.allclose(out, ref, atol=2e-3, rtol=2e-3), max_err

    print("KERNEL_OK")
</pallas_src>

<mosaic_0001>
module attributes {stable_mosaic.version = 11 : i64} {
  func.func @kernel(%arg0: i32, %arg1: memref<1x256x32xf32, #tpu.memory_space<vmem>>, %arg2: memref<1x16x256xf32, #tpu.memory_space<vmem>>, %arg3: memref<32x16xf32, #tpu.memory_space<vmem>>, %arg4: memref<1x256xf32, #tpu.memory_space<vmem>>, %arg5: memref<9x16x16xf32, #tpu.memory_space<vmem>>, %arg6: memref<16x256xf32, #tpu.memory_space<vmem>>, %arg7: memref<9x256xf32, #tpu.memory_space<vmem>>, %arg8: memref<1x16x256xf32, #tpu.memory_space<vmem>>, %arg9: memref<16x256xf32, #tpu.memory_space<vmem>>) attributes {dimension_semantics = [#tpu.dimension_semantics<parallel>], iteration_bounds = array<i64: 2>, scalar_prefetch = 0 : i64, scratch_operands = 1 : i64, tpu.core_type = #tpu.core_type<tc>, window_params = [{transform_indices = @transform_0, window_bounds = array<i64: 1, 256, 32>}, {transform_indices = @transform_1, window_bounds = array<i64: 1, 16, 256>}, {pipeline_mode = #tpu.pipeline_mode<synchronous>, transform_indices = @transform_2, window_bounds = array<i64: 32, 16>}, {pipeline_mode = #tpu.pipeline_mode<synchronous>, transform_indices = @transform_3, window_bounds = array<i64: 1, 256>}, {pipeline_mode = #tpu.pipeline_mode<synchronous>, transform_indices = @transform_4, window_bounds = array<i64: 9, 16, 16>}, {pipeline_mode = #tpu.pipeline_mode<synchronous>, transform_indices = @transform_5, window_bounds = array<i64: 16, 256>}, {pipeline_mode = #tpu.pipeline_mode<synchronous>, transform_indices = @transform_6, window_bounds = array<i64: 9, 256>}, {transform_indices = @transform_7, window_bounds = array<i64: 1, 16, 256>}]} {
    %c0 = arith.constant 0 : index
    %c0_0 = arith.constant 0 : index
    %c0_1 = arith.constant 0 : index
    %0 = vector.load %arg1[%c0, %c0_0, %c0_1] : memref<1x256x32xf32, #tpu.memory_space<vmem>>, vector<1x256x32xf32>
    %1 = vector.shape_cast %0 : vector<1x256x32xf32> to vector<256x32xf32>
    %c0_2 = arith.constant 0 : index
    %c0_3 = arith.constant 0 : index
    %2 = vector.load %arg3[%c0_2, %c0_3] : memref<32x16xf32, #tpu.memory_space<vmem>>, vector<32x16xf32>
    %cst = arith.constant dense<0.000000e+00> : vector<256x16xf32>
    %3 = tpu.matmul %1, %2, %cst {dimension_numbers = #tpu.dot_dimension_numbers<[1], [0], [0], [1], [0, 0, 1, 1], [], []>} : vector<256x32xf32>, vector<32x16xf32>, vector<256x16xf32> -> vector<256x16xf32>
    %4 = vector.extract_strided_slice %3 {offsets = [0, 0], sizes = [16, 16], strides = [1, 1]} : vector<256x16xf32> to vector<16x16xf32>
    %c0_4 = arith.constant 0 : index
    %c0_5 = arith.constant 0 : index
    %5 = vector.load %arg9[%c0_4, %c0_5] : memref<16x256xf32, #tpu.memory_space<vmem>>, vector<16x16xf32>
    tpu.vector_store %arg9[%c0_4, %c0_5], %4 {strides = array<i32>} : memref<16x256xf32, #tpu.memory_space<vmem>>, vector<16x16xf32>,
    %6 = vector.extract_strided_slice %3 {offsets = [16, 0], sizes = [16, 16], strides = [1, 1]} : vector<256x16xf32> to vector<16x16xf32>
    %c0_6 = arith.constant 0 : index
    %c16 = arith.constant 16 : index
    %7 = vector.load %arg9[%c0_6, %c16] : memref<16x256xf32, #tpu.memory_space<vmem>>, vector<16x16xf32>
    tpu.vector_store %arg9[%c0_6, %c16], %6 {strides = array<i32>} : memref<16x256xf32, #tpu.memory_space<vmem>>, vector<16x16xf32>,
    %8 = vector.extract_strided_slice %3 {offsets = [32, 0], sizes = [16, 16], strides = [1, 1]} : vector<256x16xf32> to vector<16x16xf32>
    %c0_7 = arith.constant 0 : index
    %c32 = arith.constant 32 : index
    %9 = vector.load %arg9[%c0_7, %c32] : memref<16x256xf32, #tpu.memory_space<vmem>>, vector<16x16xf32>
    tpu.vector_store %arg9[%c0_7, %c32], %8 {strides = array<i32>} : memref<16x256xf32, #tpu.memory_space<vmem>>, vector<16x16xf32>,
    %10 = vector.extract_strided_slice %3 {offsets = [48, 0], sizes = [16, 16], strides = [1, 1]} : vector<256x16xf32> to vector<16x16xf32>
    %c0_8 = arith.constant 0 : index
    %c48 = arith.constant 48 : index
    %11 = vector.load %arg9[%c0_8, %c48] : memref<16x256xf32, #tpu.memory_space<vmem>>, vector<16x16xf32>
    tpu.vector_store %arg9[%c0_8, %c48], %10 {strides = array<i32>} : memref<16x256xf32, #tpu.memory_space<vmem>>, vector<16x16xf32>,
    %12 = vector.extract_strided_slice %3 {offsets = [64, 0], sizes = [16, 16], strides = [1, 1]} : vector<256x16xf32> to vector<16x16xf32>
    %c0_9 = arith.constant 0 : index
    %c64 = arith.constant 64 : index
    %13 = vector.load %arg9[%c0_9, %c64] : memref<16x256xf32, #tpu.memory_space<vmem>>, vector<16x16xf32>
    tpu.vector_store %arg9[%c0_9, %c64], %12 {strides = array<i32>} : memref<16x256xf32, #tpu.memory_space<vmem>>, vector<16x16xf32>,
    %14 = vector.extract_strided_slice %3 {offsets = [80, 0], sizes = [16, 16], strides = [1, 1]} : vector<256x16xf32> to vector<16x16xf32>
    %c0_10 = arith.constant 0 : index
    %c80 = arith.constant 80 : index
    %15 = vector.load %arg9[%c0_10, %c80] : memref<16x256xf32, #tpu.memory_space<vmem>>, vector<16x16xf32>
    tpu.vector_store %arg9[%c0_10, %c80], %14 {strides = array<i32>} : memref<16x256xf32, #tpu.memory_space<vmem>>, vector<16x16xf32>,
    %16 = vector.extract_strided_slice %3 {offsets = [96, 0], sizes = [16, 16], strides = [1, 1]} : vector<256x16xf32> to vector<16x16xf32>
    %c0_11 = arith.constant 0 : index
    %c96 = arith.constant 96 : index
    %17 = vector.load %arg9[%c0_11, %c96] : memref<16x256xf32, #tpu.memory_space<vmem>>, vector<16x16xf32>
    tpu.vector_store %arg9[%c0_11, %c96], %16 {strides = array<i32>} : memref<16x256xf32, #tpu.memory_space<vmem>>, vector<16x16xf32>,
    %18 = vector.extract_strided_slice %3 {offsets = [112, 0], sizes = [16, 16], strides = [1, 1]} : vector<256x16xf32> to vector<16x16xf32>
    %c0_12 = arith.constant 0 : index
    %c112 = arith.constant 112 : index
    %19 = vector.load %arg9[%c0_12, %c112] : memref<16x256xf32, #tpu.memory_space<vmem>>, vector<16x16xf32>
    tpu.vector_store %arg9[%c0_12, %c112], %18 {strides = array<i32>} : memref<16x256xf32, #tpu.memory_space<vmem>>, vector<16x16xf32>,
    %20 = vector.extract_strided_slice %3 {offsets = [128, 0], sizes = [16, 16], strides = [1, 1]} : vector<256x16xf32> to vector<16x16xf32>
    %c0_13 = arith.constant 0 : index
    %c128 = arith.constant 128 : index
    %21 = vector.load %arg9[%c0_13, %c128] : memref<16x256xf32, #tpu.memory_space<vmem>>, vector<16x16xf32>
    tpu.vector_store %arg9[%c0_13, %c128], %20 {strides = array<i32>} : memref<16x256xf32, #tpu.memory_space<vmem>>, vector<16x16xf32>,
    %22 = vector.extract_strided_slice %3 {offsets = [144, 0], sizes = [16, 16], strides = [1, 1]} : vector<256x16xf32> to vector<16x16xf32>
    %c0_14 = arith.constant 0 : index
    %c144 = arith.constant 144 : index
    %23 = vector.load %arg9[%c0_14, %c144] : memref<16x256xf32, #tpu.memory_space<vmem>>, vector<16x16xf32>
    tpu.vector_store %arg9[%c0_14, %c144], %22 {strides = array<i32>} : memref<16x256xf32, #tpu.memory_space<vmem>>, vector<16x16xf32>,
    %24 = vector.extract_strided_slice %3 {offsets = [160, 0], sizes = [16, 16], strides = [1, 1]} : vector<256x16xf32> to vector<16x16xf32>
    %c0_15 = arith.constant 0 : index
    %c160 = arith.constant 160 : index
    %25 = vector.load %arg9[%c0_15, %c160] : memref<16x256xf32, #tpu.memory_space<vmem>>, vector<16x16xf32>
    tpu.vector_store %arg9[%c0_15, %c160], %24 {strides = array<i32>} : memref<16x256xf32, #tpu.memory_space<vmem>>, vector<16x16xf32>,
    %26 = vector.extract_strided_slice %3 {offsets = [176, 0], sizes = [16, 16], strides = [1, 1]} : vector<256x16xf32> to vector<16x16xf32>
    %c0_16 = arith.constant 0 : index
    %c176 = arith.constant 176 : index
    %27 = vector.load %arg9[%c0_16, %c176] : memref<16x256xf32, #tpu.memory_space<vmem>>, vector<16x16xf32>
    tpu.vector_store %arg9[%c0_16, %c176], %26 {strides = array<i32>} : memref<16x256xf32, #tpu.memory_space<vmem>>, vector<16x16xf32>,
    %28 = vector.extract_strided_slice %3 {offsets = [192, 0], sizes = [16, 16], strides = [1, 1]} : vector<256x16xf32> to vector<16x16xf32>
    %c0_17 = arith.constant 0 : index
    %c192 = arith.constant 192 : index
    %29 = vector.load %arg9[%c0_17, %c192] : memref<16x256xf32, #tpu.memory_space<vmem>>, vector<16x16xf32>
    tpu.vector_store %arg9[%c0_17, %c192], %28 {strides = array<i32>} : memref<16x256xf32, #tpu.memory_space<vmem>>, vector<16x16xf32>,
    %30 = vector.extract_strided_slice %3 {offsets = [208, 0], sizes = [16, 16], strides = [1, 1]} : vector<256x16xf32> to vector<16x16xf32>
    %c0_18 = arith.constant 0 : index
    %c208 = arith.constant 208 : index
    %31 = vector.load %arg9[%c0_18, %c208] : memref<16x256xf32, #tpu.memory_space<vmem>>, vector<16x16xf32>
    tpu.vector_store %arg9[%c0_18, %c208], %30 {strides = array<i32>} : memref<16x256xf32, #tpu.memory_space<vmem>>, vector<16x16xf32>,
    %32 = vector.extract_strided_slice %3 {offsets = [224, 0], sizes = [16, 16], strides = [1, 1]} : vector<256x16xf32> to vector<16x16xf32>
    %c0_19 = arith.constant 0 : index
    %c224 = arith.constant 224 : index
    %33 = vector.load %arg9[%c0_19, %c224] : memref<16x256xf32, #tpu.memory_space<vmem>>, vector<16x16xf32>
    tpu.vector_store %arg9[%c0_19, %c224], %32 {strides = array<i32>} : memref<16x256xf32, #tpu.memory_space<vmem>>, vector<16x16xf32>,
    %34 = vector.extract_strided_slice %3 {offsets = [240, 0], sizes = [16, 16], strides = [1, 1]} : vector<256x16xf32> to vector<16x16xf32>
    %c0_20 = arith.constant 0 : index
    %c240 = arith.constant 240 : index
    %35 = vector.load %arg9[%c0_20, %c240] : memref<16x256xf32, #tpu.memory_space<vmem>>, vector<16x16xf32>
    tpu.vector_store %arg9[%c0_20, %c240], %34 {strides = array<i32>} : memref<16x256xf32, #tpu.memory_space<vmem>>, vector<16x16xf32>,
    %c0_21 = arith.constant 0 : index
    %c0_22 = arith.constant 0 : index
    %36 = vector.load %arg9[%c0_21, %c0_22] : memref<16x256xf32, #tpu.memory_space<vmem>>, vector<16x256xf32>
    %c0_23 = arith.constant 0 : index
    %c0_24 = arith.constant 0 : index
    %37 = vector.load %arg4[%c0_23, %c0_24] : memref<1x256xf32, #tpu.memory_space<vmem>>, vector<1x256xf32>
    %38 = vector.broadcast %37 : vector<1x256xf32> to vector<16x256xf32>
    %39 = arith.addf %36, %38 : vector<16x256xf32>
    %40 = arith.negf %39 : vector<16x256xf32>
    %41 = math.exp %40 : vector<16x256xf32>
    %cst_25 = arith.constant 1.000000e+00 : f32
    %42 = vector.broadcast %cst_25 : f32 to vector<16x256xf32>
    %43 = arith.addf %42, %41 : vector<16x256xf32>
    %44 = arith.divf %42, %43 : vector<16x256xf32>
    %45 = math.tanh %39 : vector<16x256xf32>
    %c0_26 = arith.constant 0 : index
    %c0_27 = arith.constant 0 : index
    %c0_28 = arith.constant 0 : index
    %46 = vector.load %arg2[%c0_26, %c0_27, %c0_28] : memref<1x16x256xf32, #tpu.memory_space<vmem>>, vector<1x16x256xf32>
    %47 = vector.shape_cast %46 : vector<1x16x256xf32> to vector<16x256xf32>
    %c0_29 = arith.constant 0 : index
    %c0_30 = arith.constant 0 : index
    %48 = vector.load %arg6[%c0_29, %c0_30] : memref<16x256xf32, #tpu.memory_space<vmem>>, vector<16x256xf32>
    %c17_i32 = arith.constant 17 : i32
    %49 = tpu.dynamic_rotate %47 by %c17_i32 dim 1 : vector<16x256xf32>, i32 -> vector<16x256xf32>
    %c0_31 = arith.constant 0 : index
    %c0_32 = arith.constant 0 : index
    %50 = vector.load %arg7[%c0_31, %c0_32] : memref<9x256xf32, #tpu.memory_space<vmem>>, vector<1x256xf32>
    %51 = vector.broadcast %50 : vector<1x256xf32> to vector<16x256xf32>
    %52 = arith.mulf %49, %51 : vector<16x256xf32>
    %c0_33 = arith.constant 0 : index
    %c0_34 = arith.constant 0 : index
    %c0_35 = arith.constant 0 : index
    %53 = vector.load %arg5[%c0_33, %c0_34, %c0_35] : memref<9x16x16xf32, #tpu.memory_space<vmem>>, vector<1x16x16xf32>
    %54 = vector.shape_cast %53 : vector<1x16x16xf32> to vector<16x16xf32>
    %cst_36 = arith.constant dense<0.000000e+00> : vector<16x256xf32>
    %55 = tpu.matmul %54, %52, %cst_36 {dimension_numbers = #tpu.dot_dimension_numbers<[1], [0], [0], [1], [0, 0, 1, 1], [], []>} : vector<16x16xf32>, vector<16x256xf32>, vector<16x256xf32> -> vector<16x256xf32>
    %56 = arith.addf %48, %55 : vector<16x256xf32>
    %c16_i32 = arith.constant 16 : i32
    %57 = tpu.dynamic_rotate %47 by %c16_i32 dim 1 : vector<16x256xf32>, i32 -> vector<16x256xf32>
    %c1 = arith.constant 1 : index
    %c0_37 = arith.constant 0 : index
    %58 = vector.load %arg7[%c1, %c0_37] : memref<9x256xf32, #tpu.memory_space<vmem>>, vector<1x256xf32>
    %59 = vector.broadcast %58 : vector<1x256xf32> to vector<16x256xf32>
    %60 = arith.mulf %57, %59 : vector<16x256xf32>
    %c1_38 = arith.constant 1 : index
    %c0_39 = arith.constant 0 : index
    %c0_40 = arith.constant 0 : index
    %61 = vector.load %arg5[%c1_38, %c0_39, %c0_40] : memref<9x16x16xf32, #tpu.memory_space<vmem>>, vector<1x16x16xf32>
    %62 = vector.shape_cast %61 : vector<1x16x16xf32> to vector<16x16xf32>
    %cst_41 = arith.constant dense<0.000000e+00> : vector<16x256xf32>
    %63 = tpu.matmul %62, %60, %cst_41 {dimension_numbers = #tpu.dot_dimension_numbers<[1], [0], [0], [1], [0, 0, 1, 1], [], []>} : vector<16x16xf32>, vector<16x256xf32>, vector<16x256xf32> -> vector<16x256xf32>
    %64 = arith.addf %56, %63 : vector<16x256xf32>
    %c15_i32 = arith.constant 15 : i32
    %65 = tpu.dynamic_rotate %47 by %c15_i32 dim 1 : vector<16x256xf32>, i32 -> vector<16x256xf32>
    %c2 = arith.constant 2 : index
    %c0_42 = arith.constant 0 : index
    %66 = vector.load %arg7[%c2, %c0_42] : memref<9x256xf32, #tpu.memory_space<vmem>>, vector<1x256xf32>
    %67 = vector.broadcast %66 : vector<1x256xf32> to vector<16x256xf32>
    %68 = arith.mulf %65, %67 : vector<16x256xf32>
    %c2_43 = arith.constant 2 : index
    %c0_44 = arith.constant 0 : index
    %c0_45 = arith.constant 0 : index
    %69 = vector.load %arg5[%c2_43, %c0_44, %c0_45] : memref<9x16x16xf32, #tpu.memory_space<vmem>>, vector<1x16x16xf32>
    %70 = vector.shape_cast %69 : vector<1x16x16xf32> to vector<16x16xf32>
    %cst_46 = arith.constant dense<0.000000e+00> : vector<16x256xf32>
    %71 = tpu.matmul %70, %68, %cst_46 {dimension_numbers = #tpu.dot_dimension_numbers<[1], [0], [0], [1], [0, 0, 1, 1], [], []>} : vector<16x16xf32>, vector<16x256xf32>, vector<16x256xf32> -> vector<16x256xf32>
    %72 = arith.addf %64, %71 : vector<16x256xf32>
    %c1_i32 = arith.constant 1 : i32
    %73 = tpu.dynamic_rotate %47 by %c1_i32 dim 1 : vector<16x256xf32>, i32 -> vector<16x256xf32>
    %c3 = arith.constant 3 : index
    %c0_47 = arith.constant 0 : index
    %74 = vector.load %arg7[%c3, %c0_47] : memref<9x256xf32, #tpu.memory_space<vmem>>, vector<1x256xf32>
    %75 = vector.broadcast %74 : vector<1x256xf32> to vector<16x256xf32>
    %76 = arith.mulf %73, %75 : vector<16x256xf32>
    %c3_48 = arith.constant 3 : index
    %c0_49 = arith.constant 0 : index
    %c0_50 = arith.constant 0 : index
    %77 = vector.load %arg5[%c3_48, %c0_49, %c0_50] : memref<9x16x16xf32, #tpu.memory_space<vmem>>, vector<1x16x16xf32>
    %78 = vector.shape_cast %77 : vector<1x16x16xf32> to vector<16x16xf32>
    %cst_51 = arith.constant dense<0.000000e+00> : vector<16x256xf32>
    %79 = tpu.matmul %78, %76, %cst_51 {dimension_numbers = #tpu.dot_dimension_numbers<[1], [0], [0], [1], [0, 0, 1, 1], [], []>} : vector<16x16xf32>, vector<16x256xf32>, vector<16x256xf32> -> vector<16x256xf32>
    %80 = arith.addf %72, %79 : vector<16x256xf32>
    %c4 = arith.constant 4 : index
    %c0_52 = arith.constant 0 : index
    %81 = vector.load %arg7[%c4, %c0_52] : memref<9x256xf32, #tpu.memory_space<vmem>>, vector<1x256xf32>
    %82 = vector.broadcast %81 : vector<1x256xf32> to vector<16x256xf32>
    %83 = arith.mulf %47, %82 : vector<16x256xf32>
    %c4_53 = arith.constant 4 : index
    %c0_54 = arith.constant 0 : index
    %c0_55 = arith.constant 0 : index
    %84 = vector.load %arg5[%c4_53, %c0_54, %c0_55] : memref<9x16x16xf32, #tpu.memory_space<vmem>>, vector<1x16x16xf32>
    %85 = vector.shape_cast %84 : vector<1x16x16xf32> to vector<16x16xf32>
    %cst_56 = arith.constant dense<0.000000e+00> : vector<16x256xf32>
    %86 = tpu.matmul %85, %83, %cst_56 {dimension_numbers = #tpu.dot_dimension_numbers<[1], [0], [0], [1], [0, 0, 1, 1], [], []>} : vector<16x16xf32>, vector<16x256xf32>, vector<16x256xf32> -> vector<16x256xf32>
    %87 = arith.addf %80, %86 : vector<16x256xf32>
    %c255_i32 = arith.constant 255 : i32
    %88 = tpu.dynamic_rotate %47 by %c255_i32 dim 1 : vector<16x256xf32>, i32 -> vector<16x256xf32>
    %c5 = arith.constant 5 : index
    %c0_57 = arith.constant 0 : index
    %89 = vector.load %arg7[%c5, %c0_57] : memref<9x256xf32, #tpu.memory_space<vmem>>, vector<1x256xf32>
    %90 = vector.broadcast %89 : vector<1x256xf32> to vector<16x256xf32>
    %91 = arith.mulf %88, %90 : vector<16x256xf32>
    %c5_58 = arith.constant 5 : index
    %c0_59 = arith.constant 0 : index
    %c0_60 = arith.constant 0 : index
    %92 = vector.load %arg5[%c5_58, %c0_59, %c0_60] : memref<9x16x16xf32, #tpu.memory_space<vmem>>, vector<1x16x16xf32>
    %93 = vector.shape_cast %92 : vector<1x16x16xf32> to vector<16x16xf32>
    %cst_61 = arith.constant dense<0.000000e+00> : vector<16x256xf32>
    %94 = tpu.matmul %93, %91, %cst_61 {dimension_numbers = #tpu.dot_dimension_numbers<[1], [0], [0], [1], [0, 0, 1, 1], [], []>} : vector<16x16xf32>, vector<16x256xf32>, vector<16x256xf32> -> vector<16x256xf32>
    %95 = arith.addf %87, %94 : vector<16x256xf32>
    %c241_i32 = arith.constant 241 : i32
    %96 = tpu.dynamic_rotate %47 by %c241_i32 dim 1 : vector<16x256xf32>, i32 -> vector<16x256xf32>
    %c6 = arith.constant 6 : index
    %c0_62 = arith.constant 0 : index
    %97 = vector.load %arg7[%c6, %c0_62] : memref<9x256xf32, #tpu.memory_space<vmem>>, vector<1x256xf32>
    %98 = vector.broadcast %97 : vector<1x256xf32> to vector<16x256xf32>
    %99 = arith.mulf %96, %98 : vector<16x256xf32>
    %c6_63 = arith.constant 6 : index
    %c0_64 = arith.constant 0 : index
    %c0_65 = arith.constant 0 : index
    %100 = vector.load %arg5[%c6_63, %c0_64, %c0_65] : memref<9x16x16xf32, #tpu.memory_space<vmem>>, vector<1x16x16xf32>
    %101 = vector.shape_cast %100 : vector<1x16x16xf32> to vector<16x16xf32>
    %cst_66 = arith.constant dense<0.000000e+00> : vector<16x256xf32>
    %102 = tpu.matmul %101, %99, %cst_66 {dimension_numbers = #tpu.dot_dimension_numbers<[1], [0], [0], [1], [0, 0, 1, 1], [], []>} : vector<16x16xf32>, vector<16x256xf32>, vector<16x256xf32> -> vector<16x256xf32>
    %103 = arith.addf %95, %102 : vector<16x256xf32>
    %c240_i32 = arith.constant 240 : i32
    %104 = tpu.dynamic_rotate %47 by %c240_i32 dim 1 : vector<16x256xf32>, i32 -> vector<16x256xf32>
    %c7 = arith.constant 7 : index
    %c0_67 = arith.constant 0 : index
    %105 = vector.load %arg7[%c7, %c0_67] : memref<9x256xf32, #tpu.memory_space<vmem>>, vector<1x256xf32>
    %106 = vector.broadcast %105 : vector<1x256xf32> to vector<16x256xf32>
    %107 = arith.mulf %104, %106 : vector<16x256xf32>
    %c7_68 = arith.constant 7 : index
    %c0_69 = arith.constant 0 : index
    %c0_70 = arith.constant 0 : index
    %108 = vector.load %arg5[%c7_68, %c0_69, %c0_70] : memref<9x16x16xf32, #tpu.memory_space<vmem>>, vector<1x16x16xf32>
    %109 = vector.shape_cast %108 : vector<1x16x16xf32> to vector<16x16xf32>
    %cst_71 = arith.constant dense<0.000000e+00> : vector<16x256xf32>
    %110 = tpu.matmul %109, %107, %cst_71 {dimension_numbers = #tpu.dot_dimension_numbers<[1], [0], [0], [1], [0, 0, 1, 1], [], []>} : vector<16x16xf32>, vector<16x256xf32>, vector<16x256xf32> -> vector<16x256xf32>
    %111 = arith.addf %103, %110 : vector<16x256xf32>
    %c239_i32 = arith.constant 239 : i32
    %112 = tpu.dynamic_rotate %47 by %c239_i32 dim 1 : vector<16x256xf32>, i32 -> vector<16x256xf32>
    %c8 = arith.constant 8 : index
    %c0_72 = arith.constant 0 : index
    %113 = vector.load %arg7[%c8, %c0_72] : memref<9x256xf32, #tpu.memory_space<vmem>>, vector<1x256xf32>
    %114 = vector.broadcast %113 : vector<1x256xf32> to vector<16x256xf32>
    %115 = arith.mulf %112, %114 : vector<16x256xf32>
    %c8_73 = arith.constant 8 : index
    %c0_74 = arith.constant 0 : index
    %c0_75 = arith.constant 0 : index
    %116 = vector.load %arg5[%c8_73, %c0_74, %c0_75] : memref<9x16x16xf32, #tpu.memory_space<vmem>>, vector<1x16x16xf32>
    %117 = vector.shape_cast %116 : vector<1x16x16xf32> to vector<16x16xf32>
    %cst_76 = arith.constant dense<0.000000e+00> : vector<16x256xf32>
    %118 = tpu.matmul %117, %115, %cst_76 {dimension_numbers = #tpu.dot_dimension_numbers<[1], [0], [0], [1], [0, 0, 1, 1], [], []>} : vector<16x16xf32>, vector<16x256xf32>, vector<16x256xf32> -> vector<16x256xf32>
    %119 = arith.addf %111, %118 : vector<16x256xf32>
    %120 = math.tanh %119 : vector<16x256xf32>
    %121 = arith.addf %45, %120 : vector<16x256xf32>
    %122 = arith.mulf %121, %44 : vector<16x256xf32>
    %c0_77 = arith.constant 0 : index
    %c0_78 = arith.constant 0 : index
    %c0_79 = arith.constant 0 : index
    %123 = vector.load %arg8[%c0_77, %c0_78, %c0_79] : memref<1x16x256xf32, #tpu.memory_space<vmem>>, vector<1x16x256xf32>
    %124 = vector.shape_cast %123 : vector<1x16x256xf32> to vector<16x256xf32>
    %125 = vector.shape_cast %122 : vector<16x256xf32> to vector<1x16x256xf32>
    tpu.vector_store %arg8[%c0_77, %c0_78, %c0_79], %125 {strides = array<i32>} : memref<1x16x256xf32, #tpu.memory_space<vmem>>, vector<1x16x256xf32>,
    return
  }
  func.func @transform_0(%arg0: i32) -> (i32, i32, i32) {
    %c0_i32 = arith.constant 0 : i32
    %c0_i32_0 = arith.constant 0 : i32
    %c0_i32_1 = arith.constant 0 : i32
    return %arg0, %c0_i32, %c0_i32_0 : i32, i32, i32
  }
  func.func @transform_1(%arg0: i32) -> (i32, i32, i32) {
    %c0_i32 = arith.constant 0 : i32
    %c0_i32_0 = arith.constant 0 : i32
    %c0_i32_1 = arith.constant 0 : i32
    return %arg0, %c0_i32, %c0_i32_0 : i32, i32, i32
  }
  func.func @transform_2(%arg0: i32) -> (i32, i32) {
    %c0_i32 = arith.constant 0 : i32
    %c0_i32_0 = arith.constant 0 : i32
    %c0_i32_1 = arith.constant 0 : i32
    return %c0_i32, %c0_i32_0 : i32, i32
  }
  func.func @transform_3(%arg0: i32) -> (i32, i32) {
    %c0_i32 = arith.constant 0 : i32
    %c0_i32_0 = arith.constant 0 : i32
    %c0_i32_1 = arith.constant 0 : i32
    return %c0_i32, %c0_i32_0 : i32, i32
  }
  func.func @transform_4(%arg0: i32) -> (i32, i32, i32) {
    %c0_i32 = arith.constant 0 : i32
    %c0_i32_0 = arith.constant 0 : i32
    %c0_i32_1 = arith.constant 0 : i32
    %c0_i32_2 = arith.constant 0 : i32
    return %c0_i32, %c0_i32_0, %c0_i32_1 : i32, i32, i32
  }
  func.func @transform_5(%arg0: i32) -> (i32, i32) {
    %c0_i32 = arith.constant 0 : i32
    %c0_i32_0 = arith.constant 0 : i32
    %c0_i32_1 = arith.constant 0 : i32
    return %c0_i32, %c0_i32_0 : i32, i32
  }
  func.func @transform_6(%arg0: i32) -> (i32, i32) {
    %c0_i32 = arith.constant 0 : i32
    %c0_i32_0 = arith.constant 0 : i32
    %c0_i32_1 = arith.constant 0 : i32
    return %c0_i32, %c0_i32_0 : i32, i32
  }
  func.func @transform_7(%arg0: i32) -> (i32, i32, i32) {
    %c0_i32 = arith.constant 0 : i32
    %c0_i32_0 = arith.constant 0 : i32
    %c0_i32_1 = arith.constant 0 : i32
    return %arg0, %c0_i32, %c0_i32_0 : i32, i32, i32
  }
}

</mosaic_0001>

<bundles_post_ra>
// kernel: spatial_module_pallas.1
= control target key start
LH: loop header
LB: loop body
LE: loop exit
PB: predicated region body
PF: predicated region fallthrough
CT: control target
= control target key end

     0   :  { %s1854_s24 = smov 0   ;;  %s2361_s0 = inlined_call_operand.vmem [shape: f32[2,256,32], index: 0, kind: input, shape index: {}]   ;;  %s2362_s1 = inlined_call_operand.vmem [shape: f32[2,16,256], index: 1, kind: input, shape index: {}]   ;;  %s2363_s2 = inlined_call_operand.vmem [shape: f32[32,16], index: 2, kind: input, shape index: {}]   ;;  %s2364_s3 = inlined_call_operand.vmem [shape: f32[1,256], index: 3, kind: input, shape index: {}]   ;;  %s2365_s4 = inlined_call_operand.vmem [shape: f32[9,16,16], index: 4, kind: input, shape index: {}]   ;;  %s2366_s5 = inlined_call_operand.vmem [shape: f32[16,256], index: 5, kind: input, shape index: {}]   ;;  %s2367_s6 = inlined_call_operand.vmem [shape: f32[9,256], index: 6, kind: input, shape index: {}]   ;;  %s2368_s7 = inlined_call_operand.vmem [shape: f32[2,16,256], index: 7, kind: output, shape index: {}]  }
   0x1 LB: > { %s1616_s25 = sadd.s32 4294967295, %s1799_s24   ;;  %p1620_p0 = scmp.ge.s32.totalorder %s1799_s24, 1  ;;  %s1799_s24 = sphi %s1854_s24, %s17_s24  }
   0x2   : > { %p247_p1 = scmp.lt.s32.totalorder %s1799_s24, 3 }
   0x4   : > { %p248_p2 = pnand %p1620_p0, %p247_p1 }
   0x5   : > { %p284_p3 = scmp.lt.s32.totalorder (!%p248_p2), %s1616_s25, 1  ;;  %s1801_s19 = smov (!%p248_p2), 16  }
   0x6   : > { %251 = sbr.rel (%p248_p2) target bundleno = 422 (0x1a6), region = 48  ;;  %s1802_s20 = smov (!%p248_p2), 17  }
   0x7   : > { %s1803_s21 = smov (!%p248_p2), 15   ;;  %s1804_s22 = smov (!%p248_p2), 1  }
   0x8   : > { %s1805_s23 = smov (!%p248_p2), 127   ;;  %s1806_s26 = smov (!%p248_p2), 113  }
   0x9   : > { %s1807_s27 = smov (!%p248_p2), 112   ;;  %s1808_s28 = smov (!%p248_p2), 111  }
   0xa   : > { %s1811_s10 = smov (!%p248_p2), 96   ;;  %s1812_s17 = smov (!%p248_p2), 64  }
   0xb   : > { %v334_v0 = vld [vmem:[%s2363_s2 + $0x18] sm:$0xff]  ;;  %v333_v1 = vld [vmem:[%s2363_s2 + $0x10] sm:$0xff]  ;;  %v332_v2 = vld [vmem:[%s2363_s2 + $0x8] sm:$0xff]  ;;  %s2376_s25 = smov (!%p284_p3, %s1616_s25), 1  ;;  %vm335_vm0 = vcmask 261120   ;;  %v807_v40 = vlaneseq  ;;  %vm545_vm3 = vcmask 130048  }
   0xc   : > { %444 = vmatpush.msra.mxu0 %v334_v0  ;;  %1728 = vmatpush.msra.mxu1 %v334_v0  ;;  %v331_v3 = vld [vmem:[%s2363_s2] sm:$0xff]  ;;  %s1726_s11 = sshll.u32 %s2376_s25, 5  ;;  %s1725_s12 = sshll.u32 %s2376_s25, 8  ;;  %vm556_vm10 = vcmask 261248   ;;  %vm567_vm11 = vcmask 392448   ;;  %vm578_vm12 = vcmask 523648  }
   0xd   : > { %1729 = vmatpush.msra.mxu2 %v334_v0  ;;  %1730 = vmatpush.msra.mxu3 %v334_v0  ;;  %s1883_s15 = scalar_lea.vmem %s2362_s1, %s1726_s11  ;;  %s1888_s18 = scalar_lea.vmem %s2361_s0, %s1725_s12  ;;  %v2002_v43 = vand.u32 127, %v807_v40  ;;  %v1667_v44 = vld [vmem:[%s2367_s6 + $0x1] ss:$8 sm:$0x3]  ;;  %vm589_vm13 = vcmask 654848   ;;  %vm600_vm14 = vcmask 786048  }
   0xe   : > { %445 = vmatpush.msra.mxu0 %v333_v1  ;;  %1731 = vmatpush.msra.mxu1 %v333_v1  ;;  %v1891_v4 = vld [vmem:[%s1883_s15 + $0x10] sm:$0xff]  ;;  %v299_v5 = vld [vmem:[%s1888_s18] sm:$0xff]  ;;  %v316_v6 = vld [vmem:[%s1888_s18 + $0x88] sm:$0xff]  ;;  %v898_v48 = vperm.slane %v1667_v44, 0  ;;  %v899_v54 = vperm.slane %v1667_v44, 1  ;;  %vm611_vm15 = vcmask 917248   ;;  %s2340_s29 = scalar_lea.vmem %s2368_s7, %s1726_s11 }
   0xf   : > { %1732 = vmatpush.msra.mxu2 %v333_v1  ;;  %1733 = vmatpush.msra.mxu3 %v333_v1  ;;  %v321_v7 = vld [vmem:[%s1888_s18 + $0xb0] sm:$0xff]  ;;  %v326_v8 = vld [vmem:[%s1888_s18 + $0xd8] sm:$0xff]  ;;  %v1904_v9 = vld [vmem:[%s1883_s15] sm:$0xff]  ;;  %vm890_vm1 = vcmp.lt.s32.totalorder %v2002_v43, 16  ;;  %vm809_vm2 = vcmp.lt.s32.totalorder %v2002_v43, 17  ;;  %vm973_vm4 = vcmp.lt.s32.totalorder %v2002_v43, 15 }
  0x10   : > { %446 = vmatpush.msra.mxu0 %v332_v2  ;;  %1734 = vmatpush.msra.mxu1 %v332_v2  ;;  %v1909_v10 = vld [vmem:[%s1883_s15 + $0x18] sm:$0xff]  ;;  %v300_v11 = vld [vmem:[%s1888_s18 + $0x8] sm:$0xff]  ;;  %v317_v12 = vld [vmem:[%s1888_s18 + $0x90] sm:$0xff]  ;;  %vm1056_vm5 = vcmp.lt.s32.totalorder %v2002_v43, 1  ;;  %vm1209_vm6 = vcmp.lt.s32.totalorder %v2002_v43, 127  ;;  %vm1375_vm7 = vcmp.lt.s32.totalorder %v2002_v43, 112 }
  0x11   : > { %1735 = vmatpush.msra.mxu2 %v332_v2  ;;  %1736 = vmatpush.msra.mxu3 %v332_v2  ;;  %v322_v13 = vld [vmem:[%s1888_s18 + $0xb8] sm:$0xff]  ;;  %v327_v14 = vld [vmem:[%s1888_s18 + $0xe0] sm:$0xff]  ;;  %v1922_v15 = vld [vmem:[%s1883_s15 + $0x8] sm:$0xff]  ;;  %s1809_s15 = smov 48   ;;  %vm1292_vm8 = vcmp.lt.s32.totalorder %v2002_v43, 113  ;;  %vm1458_vm9 = vcmp.lt.s32.totalorder %v2002_v43, 111 }
  0x12   : > { %447 = vmatpush.msra.mxu0 %v331_v3  ;;  %1737 = vmatpush.msra.mxu1 %v331_v3  ;;  %v301_v16 = vld [vmem:[%s1888_s18 + $0x10] sm:$0xff]  ;;  %v323_v17 = vld [vmem:[%s1888_s18 + $0xc0] sm:$0xff]  ;;  %v318_v18 = vld [vmem:[%s1888_s18 + $0x98] sm:$0xff] }
  0x13   : > { %1738 = vmatpush.msra.mxu2 %v331_v3  ;;  %884 = vrot.lane.b32.xlu1 %v1891_v4, %s1801_s19  ;;  %v328_v19 = vld [vmem:[%s1888_s18 + $0xe8] sm:$0xff]  ;;  %v302_v20 = vld [vmem:[%s1888_s18 + $0x18] sm:$0xff]  ;;  %v319_v21 = vld [vmem:[%s1888_s18 + $0xa0] sm:$0xff] }
  0x14   : > { %801 = vrot.lane.b32.xlu0 %v1891_v4, %s1802_s20  ;;  %1627 = vmatmul.msk.f32.vlgmr.msra.gmra.mxu0 %vm335_vm0, %v299_v5  ;;  %v324_v22 = vld [vmem:[%s1888_s18 + $0xc8] sm:$0xff]  ;;  %v303_v23 = vld [vmem:[%s1888_s18 + $0x20] sm:$0xff]  ;;  %v325_v24 = vld [vmem:[%s1888_s18 + $0xd0] sm:$0xff] }
  0x15   : > { %1644 = vmatmul.msk.f32.vlgmr.msra.gmra.mxu1 %vm335_vm0, %v316_v6  ;;  %1649 = vmatmul.msk.f32.vlgmr.msra.gmra.mxu2 %vm335_vm0, %v321_v7  ;;  %v320_v25 = vld [vmem:[%s1888_s18 + $0xa8] sm:$0xff]  ;;  %v305_v27 = vld [vmem:[%s1888_s18 + $0x30] sm:$0xff]  ;;  %v306_v28 = vld [vmem:[%s1888_s18 + $0x38] sm:$0xff] }
  0x16   : > { %1739 = vmatpush.msra.mxu3 %v331_v3  ;;  %799 = vrot.lane.b32.xlu2 %v1904_v9, %s1802_s20  ;;  %v304_v26 = vld [vmem:[%s1888_s18 + $0x28] sm:$0xff]  ;;  %v307_v29 = vld [vmem:[%s1888_s18 + $0x40] sm:$0xff]  ;;  %v329_v30 = vld [vmem:[%s1888_s18 + $0xf0] sm:$0xff] }
  0x17   : > { %1654 = vmatmul.msk.f32.vlgmr.msra.gmra.mxu3 %vm335_vm0, %v326_v8  ;;  %v308_v31 = vld [vmem:[%s1888_s18 + $0x48] sm:$0xff]  ;;  %v309_v32 = vld [vmem:[%s1888_s18 + $0x50] sm:$0xff]  ;;  %v330_v33 = vld [vmem:[%s1888_s18 + $0xf8] sm:$0xff] }
  0x18   : > { %v310_v34 = vld [vmem:[%s1888_s18 + $0x58] sm:$0xff]  ;;  %v311_v35 = vld [vmem:[%s1888_s18 + $0x60] sm:$0xff]  ;;  %v312_v37 = vld [vmem:[%s1888_s18 + $0x68] sm:$0xff] }
  0x19   : > { %v313_v39 = vld [vmem:[%s1888_s18 + $0x70] sm:$0xff]  ;;  %v314_v45 = vld [vmem:[%s1888_s18 + $0x78] sm:$0xff]  ;;  %v814_v46 = vld [vmem:[%s2367_s6] ss:$8 sm:$0x3] }
  0x1a   : > { %v816_v49 = vperm.slane %v814_v46, 0  ;;  %v817_v50 = vperm.slane %v814_v46, 1  ;;  %v824_v5 = vld [vmem:[%s2365_s4] sm:$0xff]  ;;  %v1711_v43 = vld [vmem:[%s2365_s4 + $0x78] sm:$0xff] }
  0x1b   : > { %888 = vrot.lane.b32.xlu1 %v1909_v10, %s1801_s19  ;;  %v1675_v44 = vld [vmem:[%s2365_s4 + $0x20] sm:$0xff] }
  0x1c   : > { %805 = vrot.lane.b32.xlu0 %v1909_v10, %s1802_s20  ;;  %1628 = vmatmul.msk.f32.gmra.mxu0 %vm335_vm0, %v300_v11 }
  0x1d   : > { %1645 = vmatmul.msk.f32.gmra.mxu1 %vm335_vm0, %v317_v12  ;;  %1650 = vmatmul.msk.f32.gmra.mxu2 %vm335_vm0, %v322_v13 }
  0x1e   : > { %803 = vrot.lane.b32.xlu2 %v1922_v15, %s1802_s20  ;;  %s1813_s20 = smov 32  }
  0x1f   : > { %1655 = vmatmul.msk.f32.gmra.mxu3 %vm335_vm0, %v327_v14 }
  0x23   : > { %886 = vrot.lane.b32.xlu1 %v1922_v15, %s1801_s19 }
  0x24   : > { %882 = vrot.lane.b32.xlu0 %v1904_v9, %s1801_s19  ;;  %1629 = vmatmul.msk.f32.gmra.mxu0 %vm335_vm0, %v301_v16 }
  0x25   : > { %1651 = vmatmul.msk.f32.gmra.mxu2 %vm335_vm0, %v323_v17  ;;  %1646 = vmatmul.msk.f32.gmra.mxu1 %vm335_vm0, %v318_v18  ;;  %v1668_v17 = vld [vmem:[%s2365_s4 + $0x10] sm:$0xff] }
  0x26   : > { %967 = vrot.lane.b32.xlu2 %v1891_v4, %s1803_s21 }
  0x27   : > { %1656 = vmatmul.msk.f32.gmra.mxu3 %vm335_vm0, %v328_v19  ;;  %v1674_v19 = vld [vmem:[%s2367_s6 + $0x2] ss:$8 sm:$0x3] }
  0x2b   : > { %965 = vrot.lane.b32.xlu1 %v1904_v9, %s1803_s21 }
  0x2c   : > { %971 = vrot.lane.b32.xlu0 %v1909_v10, %s1803_s21  ;;  %1630 = vmatmul.msk.f32.gmra.mxu0 %vm335_vm0, %v302_v20 }
  0x2d   : > { %1647 = vmatmul.msk.f32.gmra.mxu1 %vm335_vm0, %v319_v21  ;;  %1652 = vmatmul.msk.f32.gmra.mxu2 %vm335_vm0, %v324_v22  ;;  %v825_v21 = vld [vmem:[%s2365_s4 + $0x8] sm:$0xff] }
  0x2e   : > { %969 = vrot.lane.b32.xlu2 %v1922_v15, %s1803_s21 }
  0x2f   : > { %1657 = vmatmul.msk.f32.gmra.mxu3 %vm335_vm0, %v329_v30 }
  0x33   : > { %1054 = vrot.lane.b32.xlu1 %v1909_v10, %s1804_s22 }
  0x34   : > { %1631 = vmatmul.msk.f32.gmra.mxu0 %vm335_vm0, %v303_v23  ;;  %1050 = vrot.lane.b32.xlu0 %v1891_v4, %s1804_s22  ;;  %v315_v23 = vld [vmem:[%s1888_s18 + $0x80] sm:$0xff] }
  0x35   : > { %1653 = vmatmul.msk.f32.gmra.mxu2 %vm335_vm0, %v325_v24  ;;  %1648 = vmatmul.msk.f32.gmra.mxu1 %vm335_vm0, %v320_v25  ;;  %v981_v24 = vperm.slane %v1674_v19, 0  ;;  %v982_v25 = vperm.slane %v1674_v19, 1 }
  0x36   : > { %1048 = vrot.lane.b32.xlu2 %v1904_v9, %s1804_s22 }
  0x37   : > { %1658 = vmatmul.msk.f32.gmra.mxu3 %vm335_vm0, %v330_v33 }
  0x3b   : > { %1203 = vrot.lane.b32.xlu1 %v1891_v4, %s1805_s23 }
  0x3c   : > { %1632 = vmatmul.msk.f32.gmra.mxu0 %vm335_vm0, %v304_v26  ;;  %1052 = vrot.lane.b32.xlu0 %v1922_v15, %s1804_s22 }
  0x3e   : > { %1207 = vrot.lane.b32.xlu2 %v1909_v10, %s1805_s23 }
  0x43   : > { %1205 = vrot.lane.b32.xlu1 %v1922_v15, %s1805_s23 }
  0x44   : > { %1633 = vmatmul.msk.f32.gmra.mxu0 %vm335_vm0, %v305_v27  ;;  %1201 = vrot.lane.b32.xlu0 %v1904_v9, %s1805_s23  ;;  %v2051_v27 = vld [vmem:[%s2367_s6 + $0x4] ss:$8 sm:$0x3] }
  0x46   : > { %1286 = vrot.lane.b32.xlu2 %v1891_v4, %s1806_s26 }
  0x4b   : > { %1369 = vrot.lane.b32.xlu1 %v1891_v4, %s1807_s27 }
  0x4c   : > { %1634 = vmatmul.msk.f32.gmra.mxu0 %vm335_vm0, %v306_v28  ;;  %1290 = vrot.lane.b32.xlu0 %v1909_v10, %s1806_s26 }
  0x4e   : > { %1373 = vrot.lane.b32.xlu2 %v1909_v10, %s1807_s27 }
  0x53   : > { %1288 = vrot.lane.b32.xlu1 %v1922_v15, %s1806_s26 }
  0x54   : > { %1635 = vmatmul.msk.f32.gmra.mxu0 %vm335_vm0, %v307_v29  ;;  %1284 = vrot.lane.b32.xlu0 %v1904_v9, %s1806_s26 }
  0x56   : > { %1367 = vrot.lane.b32.xlu2 %v1904_v9, %s1807_s27 }
  0x5b   : > { %1452 = vrot.lane.b32.xlu1 %v1891_v4, %s1808_s28 }
  0x5c   : > { %1636 = vmatmul.msk.f32.gmra.mxu0 %vm335_vm0, %v308_v31  ;;  %1371 = vrot.lane.b32.xlu0 %v1922_v15, %s1807_s27 }
  0x5e   : > { %1456 = vrot.lane.b32.xlu2 %v1909_v10, %s1808_s28 }
  0x63   : > { %1454 = vrot.lane.b32.xlu1 %v1922_v15, %s1808_s28 }
  0x64   : > { %1637 = vmatmul.msk.f32.gmra.mxu0 %vm335_vm0, %v309_v32  ;;  %1450 = vrot.lane.b32.xlu0 %v1904_v9, %s1808_s28  ;;  %s1810_s28 = smov 80  }
  0x6c   : > { %1638 = vmatmul.msk.f32.gmra.mxu0 %vm335_vm0, %v310_v34  ;;  %v1134_v34 = vperm.slane %v2051_v27, 0 }
  0x70   : > { %v800_v36 = vpop.permute.xlu2 %799 }
  0x74   : > { %1639 = vmatmul.msk.f32.gmra.mxu0 %vm335_vm0, %v311_v35 }
  0x78   : > { %v804_v38 = vpop.permute.xlu2 %803 }
  0x79   : > { %v810_v52 = vsel %vm809_vm2, %v800_v36, %v804_v38  ;;  %v812_v53 = vsel %vm809_vm2, %v804_v38, %v800_v36 }
  0x7a   : > { %v820_v63 = vmul.f32 %v816_v49, %v812_v53  ;;  %v821_v0 = vmul.f32 %v817_v50, %v810_v52 }
  0x7c   : > { %1640 = vmatmul.msk.f32.gmra.mxu0 %vm335_vm0, %v312_v37 }
  0x80   : > { %v2011_v47 = vpop.permute.xlu2 %967 }
  0x84   : > { %1641 = vmatmul.msk.f32.gmra.mxu0 %vm335_vm0, %v313_v39  ;;  %v1669_v39 = vld [vmem:[%s2365_s4 + $0x18] sm:$0xff] }
  0x85   : > { %v885_v41 = vpop.permute.xlu1 %884 }
  0x86   : > { %v802_v42 = vpop.permute.xlu0 %801 }
  0x88   : > { %v970_v6 = vpop.permute.xlu2 %969 }
  0x8c   : > { %1642 = vmatmul.msk.f32.gmra.mxu0 %vm335_vm0, %v314_v45  ;;  %v1140_v45 = vmul.f32 %v1134_v34, %v1891_v4 }
  0x8d   : > { %v889_v51 = vpop.permute.xlu1 %888 }
  0x8e   : > { %v894_v55 = vsel %vm890_vm1, %v889_v51, %v885_v41  ;;  %v806_v56 = vpop.permute.xlu0 %805  ;;  %v892_v57 = vsel %vm890_vm1, %v885_v41, %v889_v51  ;;  %v1681_v41 = vld [vmem:[%s2367_s6 + $0x3] ss:$8 sm:$0x3]  ;;  %v1138_v51 = vmul.f32 %v1134_v34, %v1904_v9 }
  0x8f   : > { %v811_v58 = vsel %vm809_vm2, %v802_v42, %v806_v56  ;;  %v813_v59 = vsel %vm809_vm2, %v806_v56, %v802_v42  ;;  %v904_v60 = vmul.f32 %v898_v48, %v894_v55  ;;  %v905_v2 = vmul.f32 %v899_v54, %v892_v57  ;;  %v1676_v9 = vld [vmem:[%s2365_s4 + $0x28] sm:$0xff] }
  0x90   : > { %v822_v61 = vmul.f32 %v816_v49, %v813_v59  ;;  %v823_v62 = vmul.f32 %v817_v50, %v811_v58  ;;  %v2044_v22 = vpop.permute.xlu2 %1048  ;;  %v1695_v59 = vld [vmem:[%s2367_s6 + $0x5] ss:$8 sm:$0x3] }
  0x91   : > { %v449_v1 = vpop.f32.mrf.mxu0  ;;  %929 = vmatpush.msrb.mxu3 %v904_v60  ;;  %v1218_v60 = vperm.slane %v1695_v59, 1 }
  0x92   : > { %546 = vst.msk [vmem:[#allocation2] sm:$0xff] %vm545_vm3, %v449_v1  ;;  %v500_v3 = vpop.f32.mrf.mxu1  ;;  %846 = vmatpush.msrb.mxu1 %v822_v61  ;;  %869 = vmatpush.msrb.mxu2 %v823_v62  ;;  %v1135_v61 = vperm.slane %v2051_v27, 1  ;;  %v1217_v1 = vperm.slane %v1695_v59, 0  ;;  %v2128_v27 = vld [vmem:[%s2367_s6 + $0x7] ss:$8 sm:$0x3] }
  0x93   : > { %626 = vst.msk [vmem:[#allocation2 + $0x18] sm:$0xff] %vm545_vm3, %v500_v3 }
  0x94   : > { %847 = vmatpush.msrb.mxu1 %v820_v63  ;;  %870 = vmatpush.msrb.mxu2 %v821_v0  ;;  %v1139_v19 = vmul.f32 %v1135_v61, %v1922_v15 }
  0x95   : > { %1663 = vmatmul.msk.f32.vlgmr.msrb.gmra.mxu1 %vm545_vm3, %v824_v5  ;;  %1665 = vmatmul.msk.f32.vlgmr.msrb.gmra.mxu2 %vm545_vm3, %v824_v5  ;;  %v887_v7 = vpop.permute.xlu1 %886 }
  0x96   : > { %952 = vmatpush.msra.mxu1 %v905_v2  ;;  %v883_v8 = vpop.permute.xlu0 %882  ;;  %1643 = vmatmul.msk.f32.gmra.mxu0 %vm335_vm0, %v315_v23  ;;  %vm622_vm0 = vcmask 1048448  }
  0x97   : > { %v891_v11 = vsel %vm890_vm1, %v883_v8, %v887_v7  ;;  %v893_v12 = vsel %vm890_vm1, %v887_v7, %v883_v8 }
  0x98   : > { %v903_v13 = vmul.f32 %v899_v54, %v891_v11  ;;  %v515_v14 = vpop.f32.mrf.mxu2  ;;  %v902_v16 = vmul.f32 %v898_v48, %v893_v12  ;;  %v1208_v46 = vpop.permute.xlu2 %1207  ;;  %v1065_v48 = vperm.slane %v1681_v41, 1 }
  0x99   : > { %649 = vrot.lane.b32.xlu0 %v515_v14, %s1809_s15  ;;  %v452_v18 = vpop.f32.mrf.mxu0  ;;  %v1141_v14 = vmul.f32 %v1135_v61, %v1909_v10 }
  0x9a   : > { %547 = vst.msk [vmem:[#allocation2 + $0x10] sm:$0xff] %vm545_vm3, %v452_v18  ;;  %v503_v20 = vpop.f32.mrf.mxu1  ;;  %930 = vmatpush.msrb.mxu3 %v902_v16  ;;  %953 = vmatpush.msra.mxu1 %v903_v13  ;;  %v530_v26 = vpop.f32.mrf.mxu3 }
  0x9b   : > { %1670 = vmatmul.msk.f32.vlgmr.msrb.gmra.mxu3 %vm545_vm3, %v1668_v17  ;;  %629 = vrot.lane.b32.xlu1 %v503_v20, %s1801_s19 }
  0x9d   : > { %1664 = vmatmul.msk.f32.gmra.mxu1 %vm545_vm3, %v825_v21  ;;  %1666 = vmatmul.msk.f32.gmra.mxu2 %vm545_vm3, %v825_v21  ;;  %v966_v28 = vpop.permute.xlu1 %965 }
  0x9e   : > { %v972_v29 = vpop.permute.xlu0 %971  ;;  %v976_v30 = vsel %vm973_vm4, %v970_v6, %v966_v28  ;;  %v974_v33 = vsel %vm973_vm4, %v966_v28, %v970_v6 }
  0x9f   : > { %v975_v31 = vsel %vm973_vm4, %v2011_v47, %v972_v29  ;;  %v977_v32 = vsel %vm973_vm4, %v972_v29, %v2011_v47  ;;  %v985_v37 = vmul.f32 %v981_v24, %v976_v30  ;;  %v986_v42 = vmul.f32 %v982_v25, %v974_v33  ;;  %v1702_v29 = vld [vmem:[%s2367_s6 + $0x6] ss:$8 sm:$0x3]  ;;  %v1683_v30 = vld [vmem:[%s2365_s4 + $0x38] sm:$0xff] }
  0xa0   : > { %v987_v35 = vmul.f32 %v981_v24, %v977_v32  ;;  %v988_v36 = vmul.f32 %v982_v25, %v975_v31  ;;  %v518_v38 = vpop.f32.mrf.mxu2  ;;  %v1064_v47 = vperm.slane %v1681_v41, 0  ;;  %v2095_v63 = vpop.permute.xlu2 %1286  ;;  %v1689_v24 = vld [vmem:[%s2365_s4 + $0x40] sm:$0xff]  ;;  %v1383_v31 = vperm.slane %v2128_v27, 0 }
  0xa1   : > { %671 = vrot.lane.b32.xlu0 %v530_v26, %s1810_s28  ;;  %v455_v40 = vpop.f32.mrf.mxu0  ;;  %v1300_v32 = vperm.slane %v1702_v29, 0  ;;  %v1301_v33 = vperm.slane %v1702_v29, 1 }
  0xa2   : > { %1012 = vmatpush.msra.mxu2 %v987_v35  ;;  %550 = vrot.lane.b32.xlu2 %v455_v40, %s1801_s19  ;;  %v506_v49 = vpop.f32.mrf.mxu1  ;;  %v533_v53 = vpop.f32.mrf.mxu3 }
  0xa3   : > { %1671 = vmatmul.msk.f32.gmra.mxu3 %vm545_vm3, %v1669_v39  ;;  %651 = vrot.lane.b32.xlu1 %v518_v38, %s1809_s15 }
  0xa4   : > { %1013 = vmatpush.msra.mxu2 %v985_v37  ;;  %1035 = vmatpush.msra.mxu3 %v988_v36 }
  0xa5   : > { %1672 = vmatmul.msk.f32.vlgmr.msra.gmra.mxu1 %vm545_vm3, %v1668_v17  ;;  %1677 = vmatmul.msk.f32.vlgmr.msra.gmra.mxu2 %vm545_vm3, %v1675_v44  ;;  %v1055_v50 = vpop.permute.xlu1 %1054  ;;  %v1682_v17 = vld [vmem:[%s2365_s4 + $0x30] sm:$0xff] }
  0xa6   : > { %v1051_v52 = vpop.permute.xlu0 %1050  ;;  %1036 = vmatpush.msra.mxu3 %v986_v42  ;;  %v1690_v42 = vld [vmem:[%s2365_s4 + $0x48] sm:$0xff] }
  0xa7   : > { %v1058_v4 = vsel %vm1056_vm5, %v1051_v52, %v1055_v50  ;;  %v1060_v54 = vsel %vm1056_vm5, %v1055_v50, %v1051_v52 }
  0xa8   : > { %1165 = vmatpush.msrb.mxu3 %v1140_v45  ;;  %v521_v55 = vpop.f32.mrf.mxu2  ;;  %v1070_v56 = vmul.f32 %v1064_v47, %v1060_v54  ;;  %v1071_v57 = vmul.f32 %v1065_v48, %v1058_v4  ;;  %v1374_v23 = vpop.permute.xlu2 %1373 }
  0xa9   : > { %679 = vrot.lane.b32.xlu0 %v533_v53, %s1811_s10  ;;  %v458_v58 = vpop.f32.mrf.mxu0 }
  0xaa   : > { %1166 = vmatpush.msrb.mxu3 %v1138_v51  ;;  %631 = vrot.lane.b32.xlu2 %v506_v49, %s1801_s19  ;;  %v509_v6 = vpop.f32.mrf.mxu1  ;;  %v536_v13 = vpop.f32.mrf.mxu3  ;;  %v1384_v49 = vperm.slane %v2128_v27, 1 }
  0xab   : > { %1095 = vmatpush.msrb.mxu1 %v1070_v56  ;;  %1679 = vmatmul.msk.f32.vlgmr.msra.gmra.mxu3 %vm545_vm3, %v1675_v44 }
  0xac   : > { %659 = vrot.lane.b32.xlu1 %v521_v55, %s1812_s17  ;;  %1118 = vmatpush.msrb.mxu2 %v1071_v57  ;;  %v1716_v57 = vld [vmem:[%s2367_s6 + $0x10] ss:$8 sm:$0x3] }
  0xad   : > { %1673 = vmatmul.msk.f32.gmra.mxu1 %vm545_vm3, %v1669_v39  ;;  %1678 = vmatmul.msk.f32.gmra.mxu2 %vm545_vm3, %v1676_v9  ;;  %v1204_v62 = vpop.permute.xlu1 %1203  ;;  %v1466_v59 = vperm.slane %v1716_v57, 0  ;;  %v1467_v61 = vperm.slane %v1716_v57, 1 }
  0xae   : > { %v1053_v0 = vpop.permute.xlu0 %1052  ;;  %v1213_v2 = vsel %vm1209_vm6, %v1208_v46, %v1204_v62  ;;  %v1211_v7 = vsel %vm1209_vm6, %v1204_v62, %v1208_v46 }
  0xaf   : > { %v1057_v3 = vsel %vm1056_vm5, %v2044_v22, %v1053_v0  ;;  %v1059_v5 = vsel %vm1056_vm5, %v1053_v0, %v2044_v22  ;;  %v1224_v8 = vmul.f32 %v1218_v60, %v1213_v2  ;;  %v1223_v18 = vmul.f32 %v1217_v1, %v1211_v7 }
  0xb0   : > { %v1068_v11 = vmul.f32 %v1064_v47, %v1059_v5  ;;  %v1069_v12 = vmul.f32 %v1065_v48, %v1057_v3  ;;  %v524_v10 = vpop.f32.mrf.mxu2  ;;  %v1368_v47 = vpop.permute.xlu2 %1367  ;;  %v1696_v48 = vld [vmem:[%s2365_s4 + $0x50] sm:$0xff] }
  0xb1   : > { %552 = vrot.lane.b32.xlu0 %v458_v58, %s1801_s19  ;;  %v461_v16 = vpop.f32.mrf.mxu0  ;;  %1271 = vmatpush.msra.mxu3 %v1224_v8 }
  0xb2   : > { %639 = vrot.lane.b32.xlu2 %v509_v6, %s1813_s20  ;;  %1096 = vmatpush.msrb.mxu1 %v1068_v11  ;;  %v512_v37 = vpop.f32.mrf.mxu1 }
  0xb3   : > { %1680 = vmatmul.msk.f32.gmra.mxu3 %vm545_vm3, %v1676_v9  ;;  %1119 = vmatpush.msrb.mxu2 %v1069_v12  ;;  %v1697_v9 = vld [vmem:[%s2365_s4 + $0x58] sm:$0xff]  ;;  %v1703_v12 = vld [vmem:[%s2365_s4 + $0x60] sm:$0xff] }
  0xb4   : > { %681 = vrot.lane.b32.xlu1 %v536_v13, %s1811_s10  ;;  %1188 = vmatpush.msra.mxu1 %v1141_v14 }
  0xb5   : > { %1684 = vmatmul.msk.f32.vlgmr.msrb.gmra.mxu1 %vm545_vm3, %v1682_v17  ;;  %1686 = vmatmul.msk.f32.vlgmr.msrb.gmra.mxu2 %vm545_vm3, %v1682_v17  ;;  %v1206_v20 = vpop.permute.xlu1 %1205 }
  0xb6   : > { %v1202_v21 = vpop.permute.xlu0 %1201  ;;  %1248 = vmatpush.msra.mxu2 %v1223_v18  ;;  %1189 = vmatpush.msra.mxu1 %v1139_v19  ;;  %v1710_v18 = vld [vmem:[%s2365_s4 + $0x70] sm:$0xff] }
  0xb7   : > { %v1210_v22 = vsel %vm1209_vm6, %v1202_v21, %v1206_v20  ;;  %v1212_v15 = vsel %vm1209_vm6, %v1206_v20, %v1202_v21  ;;  %v1704_v21 = vld [vmem:[%s2365_s4 + $0x68] sm:$0xff] }
  0xb8   : > { %v1221_v25 = vmul.f32 %v1217_v1, %v1210_v22  ;;  %v1222_v26 = vmul.f32 %v1218_v60, %v1212_v15  ;;  %v527_v38 = vpop.f32.mrf.mxu2  ;;  %v1457_v60 = vpop.permute.xlu2 %1456  ;;  %v1717_v15 = vld [vmem:[%s2365_s4 + $0x80] sm:$0xff] }
  0xb9   : > { %561 = vrot.lane.b32.xlu0 %v461_v16, %s1813_s20  ;;  %v464_v28 = vpop.f32.mrf.mxu0 }
  0xba   : > { %661 = vrot.lane.b32.xlu2 %v524_v10, %s1812_s17  ;;  %1249 = vmatpush.msra.mxu2 %v1221_v25 }
  0xbb   : > { %1691 = vmatmul.msk.f32.vlgmr.msrb.gmra.mxu3 %vm545_vm3, %v1689_v24 }
  0xbc   : > { %563 = vrot.lane.b32.xlu1 %v464_v28, %s1813_s20  ;;  %1272 = vmatpush.msra.mxu3 %v1222_v26  ;;  %v539_v26 = vpop.f32.mrf.mxu3 }
  0xbd   : > { %1685 = vmatmul.msk.f32.gmra.mxu1 %vm545_vm3, %v1683_v30  ;;  %1687 = vmatmul.msk.f32.gmra.mxu2 %vm545_vm3, %v1683_v30  ;;  %v1370_v34 = vpop.permute.xlu1 %1369 }
  0xbe   : > { %v1291_v35 = vpop.permute.xlu0 %1290  ;;  %v1377_v36 = vsel %vm1375_vm7, %v1370_v34, %v1374_v23  ;;  %v1379_v50 = vsel %vm1375_vm7, %v1374_v23, %v1370_v34 }
  0xbf   : > { %v1294_v39 = vsel %vm1292_vm8, %v2095_v63, %v1291_v35  ;;  %v1296_v40 = vsel %vm1292_vm8, %v1291_v35, %v2095_v63  ;;  %v1389_v41 = vmul.f32 %v1383_v31, %v1377_v36  ;;  %v1390_v54 = vmul.f32 %v1384_v49, %v1379_v50 }
  0xc0   : > { %v1306_v44 = vmul.f32 %v1300_v32, %v1294_v39  ;;  %v1307_v45 = vmul.f32 %v1301_v33, %v1296_v40  ;;  %v795_v39 = vld [vmem:[%s2366_s5] sm:$0xff] }
  0xc1   : > { %v467_v46 = vpop.f32.mrf.mxu0  ;;  %641 = vrot.lane.b32.xlu0 %v512_v37, %s1813_s20  ;;  %1414 = vmatpush.msrb.mxu3 %v1389_v41 }
  0xc2   : > { %669 = vrot.lane.b32.xlu2 %v527_v38, %s1810_s28  ;;  %1331 = vmatpush.msrb.mxu1 %v1306_v44 }
  0xc3   : > { %1692 = vmatmul.msk.f32.gmra.mxu3 %vm545_vm3, %v1690_v42  ;;  %1354 = vmatpush.msrb.mxu2 %v1307_v45 }
  0xc4   : > { %572 = vrot.lane.b32.xlu1 %v467_v46, %s1809_s15 }
  0xc5   : > { %1693 = vmatmul.msk.f32.vlgmr.msra.gmra.mxu1 %vm545_vm3, %v1689_v24  ;;  %1698 = vmatmul.msk.f32.vlgmr.msra.gmra.mxu2 %vm545_vm3, %v1696_v48  ;;  %v1289_v51 = vpop.permute.xlu1 %1288  ;;  %v1718_v24 = vld [vmem:[%s2365_s4 + $0x88] sm:$0xff] }
  0xc6   : > { %v1285_v52 = vpop.permute.xlu0 %1284 }
  0xc7   : > { %v1293_v53 = vsel %vm1292_vm8, %v1285_v52, %v1289_v51  ;;  %v1295_v4 = vsel %vm1292_vm8, %v1289_v51, %v1285_v52  ;;  %v797_v52 = vld [vmem:[%s2366_s5 + $0x10] sm:$0xff] }
  0xc8   : > { %v1304_v55 = vmul.f32 %v1300_v32, %v1293_v53  ;;  %v1305_v56 = vmul.f32 %v1301_v33, %v1295_v4 }
  0xc9   : > { %v470_v58 = vpop.f32.mrf.mxu0 }
  0xca   : > { %574 = vrot.lane.b32.xlu2 %v470_v58, %s1809_s15  ;;  %1332 = vmatpush.msrb.mxu1 %v1304_v55 }
  0xcb   : > { %1700 = vmatmul.msk.f32.vlgmr.msra.gmra.mxu3 %vm545_vm3, %v1696_v48  ;;  %1355 = vmatpush.msrb.mxu2 %v1305_v56 }
  0xcc   : > { %1437 = vmatpush.msra.mxu1 %v1390_v54 }
  0xcd   : > { %1694 = vmatmul.msk.f32.gmra.mxu1 %vm545_vm3, %v1690_v42  ;;  %1699 = vmatmul.msk.f32.gmra.mxu2 %vm545_vm3, %v1697_v9  ;;  %v1453_v62 = vpop.permute.xlu1 %1452 }
  0xce   : > { %v1372_v63 = vpop.permute.xlu0 %1371  ;;  %v1460_v0 = vsel %vm1458_vm9, %v1453_v62, %v1457_v60  ;;  %v1462_v1 = vsel %vm1458_vm9, %v1457_v60, %v1453_v62 }
  0xcf   : > { %v1376_v2 = vsel %vm1375_vm7, %v1368_v47, %v1372_v63  ;;  %v1378_v3 = vsel %vm1375_vm7, %v1372_v63, %v1368_v47  ;;  %v1472_v5 = vmul.f32 %v1466_v59, %v1460_v0  ;;  %v1473_v8 = vmul.f32 %v1467_v61, %v1462_v1  ;;  %v796_v47 = vld [vmem:[%s2366_s5 + $0x8] sm:$0xff] }
  0xd0   : > { %v1387_v6 = vmul.f32 %v1383_v31, %v1376_v2  ;;  %v1388_v7 = vmul.f32 %v1384_v49, %v1378_v3  ;;  %v542_v31 = vpop.f32.mrf.mxu3 }
  0xd1   : > { %v473_v11 = vpop.f32.mrf.mxu0  ;;  %1497 = vmatpush.msra.mxu2 %v1472_v5 }
  0xd2   : > { %583 = vrot.lane.b32.xlu2 %v473_v11, %s1812_s17  ;;  %1415 = vmatpush.msrb.mxu3 %v1387_v6 }
  0xd3   : > { %1701 = vmatmul.msk.f32.gmra.mxu3 %vm545_vm3, %v1697_v9  ;;  %1438 = vmatpush.msra.mxu1 %v1388_v7 }
  0xd4   : > { %1520 = vmatpush.msra.mxu3 %v1473_v8 }
  0xd5   : > { %1705 = vmatmul.msk.f32.vlgmr.msrb.gmra.mxu1 %vm545_vm3, %v1703_v12  ;;  %1707 = vmatmul.msk.f32.vlgmr.msrb.gmra.mxu2 %vm545_vm3, %v1703_v12  ;;  %v1455_v13 = vpop.permute.xlu1 %1454 }
  0xd6   : > { %v1451_v14 = vpop.permute.xlu0 %1450 }
  0xd7   : > { %v1459_v16 = vsel %vm1458_vm9, %v1451_v14, %v1455_v13  ;;  %v1461_v17 = vsel %vm1458_vm9, %v1455_v13, %v1451_v14 }
  0xd8   : > { %v1470_v19 = vmul.f32 %v1466_v59, %v1459_v16  ;;  %v1471_v10 = vmul.f32 %v1467_v61, %v1461_v17 }
  0xd9   : > { %v476_v20 = vpop.f32.mrf.mxu0 }
  0xda   : > { %585 = vrot.lane.b32.xlu0 %v476_v20, %s1812_s17  ;;  %1498 = vmatpush.msra.mxu2 %v1470_v19 }
  0xdb   : > { %1712 = vmatmul.msk.f32.vlgmr.msrb.gmra.mxu3 %vm545_vm3, %v1710_v18 }
  0xdc   : > { %1521 = vmatpush.msra.mxu3 %v1471_v10 }
  0xdd   : > { %1706 = vmatmul.msk.f32.gmra.mxu1 %vm545_vm3, %v1704_v21  ;;  %1708 = vmatmul.msk.f32.gmra.mxu2 %vm545_vm3, %v1704_v21 }
  0xe1   : > { %v479_v22 = vpop.f32.mrf.mxu0 }
  0xe2   : > { %594 = vrot.lane.b32.xlu0 %v479_v22, %s1810_s28 }
  0xe3   : > { %1713 = vmatmul.msk.f32.gmra.mxu3 %vm545_vm3, %v1711_v43 }
  0xe5   : > { %1714 = vmatmul.msk.f32.vlgmr.msra.gmra.mxu1 %vm545_vm3, %v1710_v18  ;;  %1719 = vmatmul.msk.f32.vlgmr.msra.gmra.mxu2 %vm545_vm3, %v1717_v15 }
  0xe9   : > { %v482_v23 = vpop.f32.mrf.mxu0 }
  0xea   : > { %596 = vrot.lane.b32.xlu1 %v482_v23, %s1810_s28 }
  0xeb   : > { %1721 = vmatmul.msk.f32.vlgmr.msra.gmra.mxu3 %vm545_vm3, %v1717_v15 }
  0xed   : > { %1715 = vmatmul.msk.f32.gmra.mxu1 %vm545_vm3, %v1711_v43  ;;  %1720 = vmatmul.msk.f32.gmra.mxu2 %vm545_vm3, %v1718_v24 }
  0xf1   : > { %v485_v25 = vpop.f32.mrf.mxu0 }
  0xf2   : > { %605 = vrot.lane.b32.xlu1 %v485_v25, %s1811_s10 }
  0xf3   : > { %1722 = vmatmul.msk.f32.gmra.mxu3 %vm545_vm3, %v1718_v24 }
  0xf9   : > { %v488_v27 = vpop.f32.mrf.mxu0 }
  0xfa   : > { %689 = vrot.lane.b32.xlu1 %v539_v26, %s1807_s27  ;;  %607 = vrot.lane.b32.xlu2 %v488_v27, %s1811_s10 }
  0xfc   : > { %v551_v28 = vpop.permute.xlu2 %550 }
  0xfd   : > { %557 = vst.msk [vmem:[#allocation2] sm:$0xff] %vm556_vm10, %v551_v28 }
 0x101   : > { %v491_v29 = vpop.f32.mrf.mxu0 }
 0x102   : > { %616 = vrot.lane.b32.xlu2 %v491_v29, %s1807_s27 }
 0x104   : > { %v632_v30 = vpop.permute.xlu2 %631 }
 0x105   : > { %636 = vst.msk [vmem:[#allocation2 + $0x18] sm:$0xff] %vm556_vm10, %v632_v30 }
 0x109   : > { %v494_v32 = vpop.f32.mrf.mxu0 }
 0x10a   : > { %691 = vrot.lane.b32.xlu2 %v542_v31, %s1807_s27  ;;  %618 = vrot.lane.b32.xlu0 %v494_v32, %s1807_s27  ;;  %v798_v32 = vld [vmem:[%s2366_s5 + $0x18] sm:$0xff] }
 0x10b   : > { %v650_v33 = vpop.permute.xlu0 %649 }
 0x10c   : > { %v640_v35 = vpop.permute.xlu2 %639 }
 0x10d   : > { %v630_v34 = vpop.permute.xlu1 %629 }
 0x112   : > { %v849_v36 = vpop.f32.mrf.mxu1 }
 0x113   : > { %v672_v37 = vpop.permute.xlu0 %671  ;;  %v497_v42 = vpop.f32.mrf.mxu0  ;;  %v878_v45 = vadd.f32 %v849_v36, %v795_v39 }
 0x114   : > { %v662_v40 = vpop.permute.xlu2 %661  ;;  %625 = vst.msk [vmem:[#allocation2 + $0x8] sm:$0xff] %vm545_vm3, %v497_v42 }
 0x115   : > { %v652_v38 = vpop.permute.xlu1 %651  ;;  %635 = vst.msk [vmem:[#allocation2 + $0x8] sm:$0xff] %vm556_vm10, %v630_v34 }
 0x116   : > { %645 = vst.msk [vmem:[#allocation2 + $0x8] sm:$0xff] %vm567_vm11, %v640_v35  ;;  %v2297_v35 = vld [vmem:[%s2364_s3] sm:$0x3] }
 0x117   : > { %655 = vst.msk [vmem:[#allocation2 + $0x8] sm:$0xff] %vm578_vm12, %v650_v33 }
 0x118   : > { %v872_v41 = vpop.f32.mrf.mxu2 }
 0x119   : > { %v879_v50 = vadd.f32 %v872_v41, %v796_v47 }
 0x11a   : > { %v852_v44 = vpop.f32.mrf.mxu1 }
 0x11b   : > { %v680_v46 = vpop.permute.xlu0 %679  ;;  %v880_v55 = vadd.f32 %v852_v44, %v797_v52 }
 0x11c   : > { %v670_v4 = vpop.permute.xlu2 %669 }
 0x11e   : > { %v660_v48 = vpop.permute.xlu1 %659  ;;  %v932_v49 = vpop.f32.mrf.mxu3 }
 0x11f   : > { %665 = vst.msk [vmem:[#allocation2 + $0x8] sm:$0xff] %vm589_vm13, %v660_v48  ;;  %v2249_v51 = vadd.f32 %v932_v49, %v878_v45 }
 0x120   : > { %v2254_v53 = vpop.f32.mrf.mxu2  ;;  %675 = vst.msk [vmem:[#allocation2 + $0x8] sm:$0xff] %vm600_vm14, %v670_v4 }
 0x121   : > { %685 = vst.msk [vmem:[#allocation2 + $0x8] sm:$0xff] %vm611_vm15, %v680_v46  ;;  %v881_v36 = vadd.f32 %v2254_v53, %v798_v32 }
 0x122   : > { %v955_v54 = vpop.f32.mrf.mxu1 }
 0x123   : > { %v962_v56 = vadd.f32 %v955_v54, %v879_v50  ;;  %v553_v57 = vpop.permute.xlu0 %552 }
 0x124   : > { %558 = vst.msk [vmem:[#allocation2 + $0x10] sm:$0xff] %vm556_vm10, %v553_v57  ;;  %v575_v63 = vpop.permute.xlu2 %574 }
 0x126   : > { %v682_v58 = vpop.permute.xlu1 %681  ;;  %v935_v9 = vpop.f32.mrf.mxu3 }
 0x127   : > { %v963_v59 = vadd.f32 %v935_v9, %v880_v55 }
 0x128   : > { %v1015_v60 = vpop.f32.mrf.mxu2 }
 0x129   : > { %v1044_v33 = vadd.f32 %v1015_v60, %v2249_v51 }
 0x12a   : > { %v2258_v61 = vpop.f32.mrf.mxu1 }
 0x12b   : > { %v562_v62 = vpop.permute.xlu0 %561  ;;  %v964_v41 = vadd.f32 %v2258_v61, %v881_v36 }
 0x12c   : > { %568 = vst.msk [vmem:[#allocation2] sm:$0xff] %vm567_vm11, %v562_v62  ;;  %v584_v11 = vpop.permute.xlu2 %583 }
 0x12e   : > { %v564_v0 = vpop.permute.xlu1 %563  ;;  %v1038_v1 = vpop.f32.mrf.mxu3 }
 0x12f   : > { %569 = vst.msk [vmem:[#allocation2 + $0x10] sm:$0xff] %vm567_vm11, %v564_v0  ;;  %v2262_v2 = vadd.f32 %v1038_v1, %v962_v56 }
 0x130   : > { %580 = vst.msk [vmem:[#allocation2 + $0x10] sm:$0xff] %vm578_vm12, %v575_v63  ;;  %v1018_v3 = vpop.f32.mrf.mxu2 }
 0x131   : > { %v2266_v5 = vadd.f32 %v1018_v3, %v963_v59 }
 0x132   : > { %v1098_v7 = vpop.f32.mrf.mxu1 }
 0x133   : > { %v642_v6 = vpop.permute.xlu0 %641  ;;  %v1127_v39 = vadd.f32 %v1098_v7, %v1044_v33 }
 0x134   : > { %646 = vst.msk [vmem:[#allocation2 + $0x18] sm:$0xff] %vm567_vm11, %v642_v6 }
 0x135   : > { %656 = vst.msk [vmem:[#allocation2 + $0x18] sm:$0xff] %vm578_vm12, %v652_v38  ;;  %v703_v38 = vperm.slane %v2297_v35, 0 }
 0x136   : > { %v573_v8 = vpop.permute.xlu1 %572  ;;  %v1041_v12 = vpop.f32.mrf.mxu3  ;;  %666 = vst.msk [vmem:[#allocation2 + $0x18] sm:$0xff] %vm589_vm13, %v662_v40  ;;  %v704_v40 = vperm.slane %v2297_v35, 1 }
 0x137   : > { %579 = vst.msk [vmem:[#allocation2] sm:$0xff] %vm578_vm12, %v573_v8  ;;  %v1047_v50 = vadd.f32 %v1041_v12, %v964_v41 }
 0x138   : > { %590 = vst.msk [vmem:[#allocation2] sm:$0xff] %vm589_vm13, %v584_v11  ;;  %v1121_v13 = vpop.f32.mrf.mxu2 }
 0x139   : > { %676 = vst.msk [vmem:[#allocation2 + $0x18] sm:$0xff] %vm600_vm14, %v672_v37  ;;  %v1128_v52 = vadd.f32 %v1121_v13, %v2262_v2 }
 0x13a   : > { %686 = vst.msk [vmem:[#allocation2 + $0x18] sm:$0xff] %vm611_vm15, %v682_v58  ;;  %v2275_v16 = vpop.f32.mrf.mxu1 }
 0x13e   : > { %v1168_v14 = vpop.f32.mrf.mxu3 }
 0x13f   : > { %v1197_v48 = vadd.f32 %v1168_v14, %v1127_v39 }
 0x140   : > { %v1124_v17 = vpop.f32.mrf.mxu2 }
 0x141   : > { %v1130_v56 = vadd.f32 %v1124_v17, %v1047_v50 }
 0x142   : > { %v1191_v19 = vpop.f32.mrf.mxu1 }
 0x143   : > { %v1198_v58 = vadd.f32 %v1191_v19, %v1128_v52 }
 0x146   : > { %v2277_v18 = vpop.f32.mrf.mxu3 }
 0x148   : > { %v1251_v20 = vpop.f32.mrf.mxu2 }
 0x149   : > { %v1280_v54 = vadd.f32 %v1251_v20, %v1197_v48 }
 0x14a   : > { %v1194_v43 = vpop.f32.mrf.mxu1 }
 0x14b   : > { %v1200_v1 = vadd.f32 %v1194_v43, %v1130_v56 }
 0x14c   : > { %v586_v10 = vpop.permute.xlu0 %585 }
 0x14d   : > { %591 = vst.msk [vmem:[#allocation2 + $0x10] sm:$0xff] %vm589_vm13, %v586_v10 }
 0x14e   : > { %v1274_v21 = vpop.f32.mrf.mxu3 }
 0x14f   : > { %v1281_v61 = vadd.f32 %v1274_v21, %v1198_v58 }
 0x150   : > { %v2281_v24 = vpop.f32.mrf.mxu2 }
 0x152   : > { %v1334_v27 = vpop.f32.mrf.mxu1 }
 0x153   : > { %v1363_v9 = vadd.f32 %v1334_v27, %v1280_v54  ;;  %v1129_v27 = vadd.f32 %v2275_v16, %v2266_v5 }
 0x154   : > { %v595_v22 = vpop.permute.xlu0 %594  ;;  %v608_v15 = vpop.permute.xlu2 %607 }
 0x155   : > { %601 = vst.msk [vmem:[#allocation2] sm:$0xff] %vm600_vm14, %v595_v22 }
 0x156   : > { %v1277_v23 = vpop.f32.mrf.mxu3 }
 0x157   : > { %v1283_v8 = vadd.f32 %v1277_v23, %v1200_v1 }
 0x158   : > { %v1357_v29 = vpop.f32.mrf.mxu2 }
 0x159   : > { %v1364_v3 = vadd.f32 %v1357_v29, %v1281_v61 }
 0x15a   : > { %v2291_v34 = vpop.f32.mrf.mxu1 }
 0x15c   : > { %v597_v25 = vpop.permute.xlu1 %596  ;;  %v617_v26 = vpop.permute.xlu2 %616 }
 0x15d   : > { %602 = vst.msk [vmem:[#allocation2 + $0x10] sm:$0xff] %vm600_vm14, %v597_v25 }
 0x15e   : > { %613 = vst.msk [vmem:[#allocation2 + $0x10] sm:$0xff] %vm611_vm15, %v608_v15  ;;  %v1417_v28 = vpop.f32.mrf.mxu3 }
 0x15f   : > { %v1446_v62 = vadd.f32 %v1417_v28, %v1363_v9 }
 0x160   : > { %v1360_v42 = vpop.f32.mrf.mxu2 }
 0x161   : > { %v1366_v13 = vadd.f32 %v1360_v42, %v1283_v8 }
 0x162   : > { %v1440_v53 = vpop.f32.mrf.mxu1 }
 0x163   : > { %v1447_v11 = vadd.f32 %v1440_v53, %v1364_v3 }
 0x164   : > { %v606_v30 = vpop.permute.xlu1 %605  ;;  %v692_v31 = vpop.permute.xlu2 %691 }
 0x165   : > { %612 = vst.msk [vmem:[#allocation2] sm:$0xff] %vm611_vm15, %v606_v30 }
 0x166   : > { %623 = vst.msk [vmem:[#allocation2] sm:$0xff] %vm622_vm0, %v617_v26  ;;  %v2300_v37 = vpop.f32.mrf.mxu3 }
 0x167   : > { %696 = vst.msk [vmem:[#allocation2 + $0x18] sm:$0xff] %vm622_vm0, %v692_v31 }
 0x168   : > { %v1500_v60 = vpop.f32.mrf.mxu2 }
 0x169   : > { %v1529_v2 = vadd.f32 %v1500_v60, %v1446_v62  ;;  %v1199_v60 = vadd.f32 %v2277_v18, %v1129_v27 }
 0x16a   : > { %v1443_v12 = vpop.f32.mrf.mxu1 }
 0x16b   : > { %v1449_v20 = vadd.f32 %v1443_v12, %v1366_v13  ;;  %v1282_v18 = vadd.f32 %v2281_v24, %v1199_v60 }
 0x16c   : > { %v690_v44 = vpop.permute.xlu1 %689 }
 0x16d   : > { %v697_v45 = vld [vmem:[#allocation2] sm:$0xff]  ;;  %695 = vst.msk [vmem:[#allocation2 + $0x8] sm:$0xff] %vm622_vm0, %v690_v44  ;;  %v1365_v13 = vadd.f32 %v2291_v34, %v1282_v18 }
 0x16e   : > { %v707_v46 = vadd.f32 %v703_v38, %v697_v45  ;;  %v700_v47 = vld [vmem:[#allocation2 + $0x18] sm:$0xff]  ;;  %v1523_v55 = vpop.f32.mrf.mxu3 }
 0x16f   : > { %v710_v49 = vadd.f32 %v704_v40, %v700_v47  ;;  %v1530_v19 = vadd.f32 %v1523_v55, %v1447_v11 }
 0x170   : > { %v1659_v51 = vmul.f32 -1.442695, %v707_v46 }
 0x171   : > { %v1662_v4 = vmul.f32 -1.442695, %v710_v49 }
 0x172   : > { %1761 = vpow2.f32 %v1659_v51 }
 0x173   : > { %1763 = vpow2.f32 %v1662_v4 }
 0x174   : > { %v698_v57 = vld [vmem:[#allocation2 + $0x8] sm:$0xff] }
 0x175   : > { %v708_v59 = vadd.f32 %v704_v40, %v698_v57 }
 0x176   : > { %v1526_v10 = vpop.f32.mrf.mxu3 }
 0x177   : > { %v1660_v63 = vmul.f32 -1.442695, %v708_v59  ;;  %v1532_v22 = vadd.f32 %v1526_v10, %v1449_v20 }
 0x178   : > { %v1762_v0 = vpop.eup %1761 }
 0x179   : > { %v723_v6 = vadd.f32 1.0, %v1762_v0  ;;  %1765 = vpow2.f32 %v1660_v63  ;;  %v1764_v7 = vpop.eup %1763 }
 0x17a   : > { %v726_v14 = vadd.f32 1.0, %v1764_v7 }
 0x17b   : > { %1767 = vrcp.f32 %v723_v6  ;;  %v736_v28 = vand.u32 2147483647, %v723_v6  ;;  %v738_v31 = vand.u32 2147483648, %v723_v6  ;;  %vm732_vm1 = vweird.f32 %v723_v6 }
 0x17c   : > { %1769 = vtanh.f32 %v707_v46  ;;  %v619_v17 = vpop.permute.xlu0 %618  ;;  %v781_v32 = vand.u32 2147483647, %v726_v14  ;;  %v783_v40 = vand.u32 2147483648, %v726_v14  ;;  %vm777_vm4 = vweird.f32 %v726_v14 }
 0x17d   : > { %1771 = vtanh.f32 %v1529_v2  ;;  %624 = vst.msk [vmem:[#allocation2 + $0x10] sm:$0xff] %vm622_vm0, %v619_v17  ;;  %vm2317_vm3 = vcmp.eq.f32.partialorder %v736_v28, 8.507059e+37  ;;  %v739_v47 = vor.u32 1.1754944e-38, %v738_v31  ;;  %v1503_v17 = vpop.f32.mrf.mxu2 }
 0x17e   : > { %1773 = vrcp.f32 %v726_v14  ;;  %vm2321_vm6 = vcmp.eq.f32.partialorder %v781_v32, 8.507059e+37  ;;  %v784_v51 = vor.u32 1.1754944e-38, %v783_v40 }
 0x17f   : > { %v1766_v21 = vpop.eup %1765  ;;  %1775 = vtanh.f32 %v1530_v19  ;;  %v1448_v19 = vadd.f32 %v2300_v37, %v1365_v13 }
 0x180   : > { %v2310_v43 = vadd.f32 1.0, %v1766_v21 }
 0x181   : > { %v1768_v15 = vpop.eup %1767  ;;  %v1531_v10 = vadd.f32 %v1503_v17, %v1448_v19 }
 0x182   : > { %v1770_v23 = vpop.eup %1769  ;;  %v728_v25 = vmul.f32 %v1768_v15, %v723_v6  ;;  %1777 = vrcp.f32 %v2310_v43  ;;  %vm733_vm2 = vweird.f32 %v1768_v15  ;;  %vm747_vm8 = vweird.f32 %v2310_v43 }
 0x183   : > { %v1772_v26 = vpop.eup %1771  ;;  %1779 = vtanh.f32 %v710_v49  ;;  %vm734_vm7 = vmor %vm732_vm1, %vm733_vm2  ;;  %v751_v4 = vand.u32 2147483647, %v2310_v43  ;;  %v753_v54 = vand.u32 2147483648, %v2310_v43 }
 0x184   : > { %v1774_v29 = vpop.eup %1773  ;;  %v729_v30 = vsub.f32 1.0, %v728_v25  ;;  %1781 = vtanh.f32 %v1532_v22  ;;  %v699_v33 = vld [vmem:[#allocation2 + $0x10] sm:$0xff]  ;;  %v1537_v36 = vadd.f32 %v1772_v26, %v1770_v23 }
 0x185   : > { %1783 = vtanh.f32 %v708_v59  ;;  %v773_v39 = vmul.f32 %v1774_v29, %v726_v14  ;;  %v709_v42 = vadd.f32 %v703_v38, %v699_v33  ;;  %v1776_v44 = vpop.eup %1775  ;;  %vm778_vm5 = vweird.f32 %v1774_v29 }
 0x186   : > { %v730_v41 = vmul.f32 %v1768_v15, %v729_v30  ;;  %vm2331_vm9 = vmor %vm777_vm4, %vm778_vm5  ;;  %v754_v0 = vor.u32 1.1754944e-38, %v753_v54  ;;  %vm752_vm12 = vcmp.eq.f32.partialorder %v751_v4, 8.507059e+37 }
 0x187   : > { %v774_v16 = vsub.f32 1.0, %v773_v39  ;;  %v1661_v49 = vmul.f32 -1.442695, %v709_v42 }
 0x188   : > { %v1778_v45 = vpop.eup %1777  ;;  %v731_v46 = vadd.f32 %v1768_v15, %v730_v41 }
 0x189   : > { %v1780_v50 = vpop.eup %1779  ;;  %v743_v35 = vmul.f32 %v1778_v45, %v2310_v43  ;;  %v775_v38 = vmul.f32 %v1774_v29, %v774_v16  ;;  %1785 = vpow2.f32 %v1661_v49  ;;  %vm748_vm10 = vweird.f32 %v1778_v45 }
 0x18a   : > { %v1782_v52 = vpop.eup %1781  ;;  %v735_v53 = vsel %vm734_vm7, %v1768_v15, %v731_v46  ;;  %vm749_vm11 = vmor %vm747_vm8, %vm748_vm10 }
 0x18b   : > { %v1784_v56 = vpop.eup %1783  ;;  %v740_v57 = vsel %vm2317_vm3, %v739_v47, %v735_v53  ;;  %v744_v58 = vsub.f32 1.0, %v743_v35  ;;  %v776_v9 = vadd.f32 %v1774_v29, %v775_v38  ;;  %v1540_v63 = vadd.f32 %v1782_v52, %v1780_v50 }
 0x18c   : > { %v1541_v59 = vmul.f32 %v1537_v36, %v740_v57  ;;  %v1538_v8 = vadd.f32 %v1784_v56, %v1776_v44 }
 0x18d   : > { %v745_v61 = vmul.f32 %v1778_v45, %v744_v58  ;;  %v780_v62 = vsel %vm2331_vm9, %v1774_v29, %v776_v9 }
 0x18e   : > { %1545 = vst [vmem:[%s2340_s29] sm:$0xff] %v1541_v59  ;;  %v785_v1 = vsel %vm2321_vm6, %v784_v51, %v780_v62 }
 0x18f   : > { %v746_v3 = vadd.f32 %v1778_v45, %v745_v61  ;;  %v1544_v6 = vmul.f32 %v1540_v63, %v785_v1  ;;  %v1786_v2 = vpop.eup %1785 }
 0x190   : > { %v725_v11 = vadd.f32 1.0, %v1786_v2 }
 0x191   : > { %v750_v7 = vsel %vm749_vm11, %v1778_v45, %v746_v3  ;;  %1548 = vst [vmem:[%s2340_s29 + $0x18] sm:$0xff] %v1544_v6 }
 0x192   : > { %v755_v12 = vsel %vm752_vm12, %v754_v0, %v750_v7  ;;  %1787 = vrcp.f32 %v725_v11  ;;  %v768_v24 = vand.u32 2147483648, %v725_v11  ;;  %v766_v15 = vand.u32 2147483647, %v725_v11 }
 0x193   : > { %v1542_v14 = vmul.f32 %v1538_v8, %v755_v12  ;;  %1789 = vtanh.f32 %v709_v42  ;;  %vm762_vm14 = vweird.f32 %v725_v11 }
 0x194   : > { %1791 = vtanh.f32 %v1531_v10  ;;  %v769_v26 = vor.u32 1.1754944e-38, %v768_v24  ;;  %vm767_vm0 = vcmp.eq.f32.partialorder %v766_v15, 8.507059e+37 }
 0x195   : > { %1546 = vst [vmem:[%s2340_s29 + $0x8] sm:$0xff] %v1542_v14 }
 0x198   : > { %v1788_v20 = vpop.eup %1787 }
 0x199   : > { %v758_v21 = vmul.f32 %v1788_v20, %v725_v11  ;;  %vm763_vm13 = vweird.f32 %v1788_v20  ;;  %v1790_v23 = vpop.eup %1789 }
 0x19a   : > { %v1792_v34 = vpop.eup %1791  ;;  %vm764_vm15 = vmor %vm762_vm14, %vm763_vm13 }
 0x19b   : > { %v759_v43 = vsub.f32 1.0, %v758_v21  ;;  %v1539_v37 = vadd.f32 %v1792_v34, %v1790_v23 }
 0x19d   : > { %v760_v22 = vmul.f32 %v1788_v20, %v759_v43 }
 0x19f   : > { %v761_v25 = vadd.f32 %v1788_v20, %v760_v22 }
 0x1a1   : > { %v765_v27 = vsel %vm764_vm15, %v1788_v20, %v761_v25 }
 0x1a2   : > { %v770_v28 = vsel %vm767_vm0, %v769_v26, %v765_v27 }
 0x1a3   : > { %v1543_v29 = vmul.f32 %v1539_v37, %v770_v28 }
 0x1a5   : > { %1547 = vst [vmem:[%s2340_s29 + $0x10] sm:$0xff] %v1543_v29 }
 0x1a6 PF: > { %s17_s24 = sadd.s32 1, %s1799_s24  }
 0x1a7   : > { %p14_p4 = scmp.ge.s32.totalorder %s17_s24, 4  }
 0x1a9   :  { %16 = sbr.rel (!%p14_p4) target bundleno = 1 (0x1), region = 97 }

</bundles_post_ra>
